<compile_context>
chip_gen: v5e
topology: v5e:2x2
jax: 0.10.0
libtpu: 0.0.40
codegen_flags: <defaults>
</compile_context>

<pallas_src>
import jax
import jax.numpy as jnp
from jax import lax
from jax.experimental import pallas as pl
from jax.experimental.pallas import tpu as pltpu


def _vq_kernel(z_ref, e_ref, e2h_ref, zq_ref, idx_ref, sse_ref):
    """One tile of rows of z against the full codebook.

    z_ref   : (tm, D)     input rows (native dtype)
    e_ref   : (K, D)      full codebook (constant block index -> resident)
    e2h_ref : (K, 1)      precomputed 0.5 * ||e_k||^2 (f32), hoisted
    zq_ref  : (tm, D)     quantized rows (straight-through forward value)
    idx_ref : (1, 1, tm)  argmin indices, lane-dense (int32)
    sse_ref : (1, 1, D)   per-tile row-reduced partial of sum((z_q - z)^2)
    """
    z = z_ref[...]                    # (tm, D)  native dtype
    e = e_ref[...]                    # (K, D)   native dtype
    k = e.shape[0]

    # Transposed "distances": d_t[k, t] = 0.5*||e_k||^2 - <z_t, e_k>.
    # The per-row ||z_t||^2 term is a per-column constant (dropped) and the
    # global 2x scale is folded into e2h -- neither changes the argmin.
    # Native-dtype MXU operands with f32 accumulation.
    ze_t = lax.dot_general(e, z, (((1,), (1,)), ((), ())),
                           preferred_element_type=jnp.float32)       # (K, tm)
    d_t = e2h_ref[...] - ze_t                                        # (K, tm) f32

    # argmin over the codebook (sublane) axis, first-occurrence tie-break.
    # Whole index chain stays int32: no int->f32 cast pass, and the `where`
    # candidate array dies immediately after the min.
    dmin = jnp.min(d_t, axis=0, keepdims=True)                       # (1, tm) f32
    iota = lax.broadcasted_iota(jnp.int32, d_t.shape, 0)             # (K, tm) i32
    idx = jnp.min(jnp.where(d_t == dmin, iota, k),
                  axis=0, keepdims=True)                             # (1, tm) i32
    idx_ref[...] = idx.reshape(1, 1, -1)                             # lane-dense

    # Codebook gather via one-hot matmul.  Contract K as dim 0 of BOTH
    # operands so the MXU consumes the transposed one-hot directly -- no XLU
    # transpose of a (K, tm) array, no extra (tm, K) materialization.
    onehot_t = (iota == idx).astype(e.dtype)                         # (K, tm)
    zq = lax.dot_general(onehot_t, e, (((0,), (0,)), ((), ())),
                         preferred_element_type=jnp.float32)         # (tm, D)

    # Straight-through estimator forward value z + (z_q - z) == z_q: store it
    # directly (saves one VALU add pass over (tm, D)).
    zq_ref[...] = zq.astype(zq_ref.dtype)

    # Loss partial: reduce only over the row (sublane) axis -> (1, D); the tiny
    # remaining reduction happens in the wrapper.  Avoids an in-kernel
    # cross-lane scalar reduce + 128-lane broadcast on the contended XLU.
    diff = zq - z.astype(jnp.float32)                                # (tm, D) f32
    sse_ref[...] = jnp.sum(diff * diff, axis=0, keepdims=True).reshape(1, 1, -1)


def vector_quantize(z, codebook, beta, *, tm=256, legacy=True):
    """Pallas implementation of VectorQuantizer2.forward (remap=None,
    sane_index_shape=False). Forward pass only.

    z        : (B, N, D) channels-last, D == embed_dim
    codebook : (K, D)    embedding weight
    tm       : row tile. 256 fills the 256-wide MXU output on v6e/v7x and
               halves per-step pipeline overhead; use 128 on v5e (128-wide MXU,
               larger tiles only add vreg/VMEM pressure there).
    """
    # TODO(synk): forward pass only -- no custom_vjp, so straight-through and
    # commitment/codebook loss gradients are not defined through pallas_call.
    B = z.shape[0]
    D = z.shape[-1]
    K = codebook.shape[0]
    z_flat = z.reshape(-1, D)
    M = z_flat.shape[0]
    tm = min(tm, M)
    assert M % tm == 0, "row count must be divisible by the row tile"
    grid = M // tm

    # Hoisted: 0.5 * ||e_k||^2 computed once in XLA (this O(K*D) reduction
    # fuses outside the kernel and also folds the distance's `2 *` scale).
    e2_half = 0.5 * jnp.sum(codebook.astype(jnp.float32) ** 2,
                            axis=1, keepdims=True)                   # (K, 1) f32

    # VMEM budget: actual requirement (+headroom), capped well below the
    # physical ceiling (64 MiB/TC on v7x) so Mosaic keeps scratch headroom.
    in_b = jnp.dtype(z.dtype).itemsize
    cb_b = jnp.dtype(codebook.dtype).itemsize
    vmem_est = (4 * tm * D * in_b          # z in + z_q out, double-buffered
                + 2 * K * D * cb_b         # resident codebook (2 bufs worst case)
                + 2 * K * 128 * 4          # (K,1) e2_half lane-pads to (K,128)
                + 2 * (tm + 128) * 4       # idx / sse output blocks
                + 8 * K * tm * 4           # (K, tm) distance/argmin temporaries
                + 4 * tm * D * 4)          # (tm, D) f32 temporaries
    vmem_limit = int(min(max(2 * vmem_est, 8 << 20), 32 << 20))

    # NOTE(perf): for production-sized codebooks (K >~ 4-8K) additionally
    # (a) single-buffer the two constant-index inputs below
    #     (pipeline_mode=pl.Buffered(1)) to avoid dead double-buffer VMEM, and
    # (b) tile K with an inner fori_loop carrying a running (1, tm) min/argmin
    #     so the (K, tm) temporaries stay bounded.  Not needed at these sizes.
    # NOTE(perf): when D < 128 and the kernel is store-bound, a fully
    # transposed (D, M) layout makes loads/stores lane-dense, at the cost of
    # wrapper-side HBM transposes of z / z_q; not applied here.
    zq_flat, idx, sse = pl.pallas_call(
        _vq_kernel,
        out_shape=(
            jax.ShapeDtypeStruct((M, D), z.dtype),
            jax.ShapeDtypeStruct((grid, 1, tm), jnp.int32),
            jax.ShapeDtypeStruct((grid, 1, D), jnp.float32),
        ),
        grid_spec=pltpu.PrefetchScalarGridSpec(
            num_scalar_prefetch=0,
            grid=(grid,),
            in_specs=[
                pl.BlockSpec((tm, D), lambda i: (i, 0)),   # z rows, tiled
                pl.BlockSpec((K, D), lambda i: (0, 0)),    # full codebook
                pl.BlockSpec((K, 1), lambda i: (0, 0)),    # 0.5*||e||^2 (hoisted)
            ],
            out_specs=[
                pl.BlockSpec((tm, D), lambda i: (i, 0)),
                pl.BlockSpec((1, 1, tm), lambda i: (i, 0, 0)),
                pl.BlockSpec((1, 1, D), lambda i: (i, 0, 0)),
            ],
        ),
        compiler_params=pltpu.CompilerParams(
            dimension_semantics=("parallel",),   # no accumulator -> megacore OK
            vmem_limit_bytes=vmem_limit,
        ),
    )(z_flat, codebook, e2_half)

    mse = jnp.sum(sse) / jnp.float32(M * D)            # mean((z_q - z)**2)
    if legacy:
        loss = mse + beta * mse
    else:
        loss = beta * mse + mse

    z_q = zq_flat.reshape(B, -1, D)                    # z_q.reshape(bz, -1, D)
    min_encoding_indices = idx.reshape(-1)             # flat (M,) indices, int32
    # TODO(synk): remap_to_used / sane_index_shape branches not implemented
    # (remap=None, sane_index_shape=False defaults).
    return z_q, loss, min_encoding_indices


if __name__ == "__main__":
    key = jax.random.PRNGKey(0)
    n_embed, embed_dim, beta = 256, 32, 0.25
    B, N = 2, 256                     # z: (B, N, embed_dim), channels-last

    k_emb, k_z = jax.random.split(key)
    # nn.Embedding weight init: uniform(-1/n_embed, 1/n_embed)
    codebook = jax.random.uniform(
        k_emb, (n_embed, embed_dim), jnp.float32,
        minval=-1.0 / n_embed, maxval=1.0 / n_embed)
    z = jax.random.normal(k_z, (B, N, embed_dim), jnp.float32)

    z_q, loss, idx = vector_quantize(z, codebook, beta, legacy=True)
    jax.block_until_ready((z_q, loss, idx))

    assert z_q.shape == (B, N, embed_dim)
    assert idx.shape == (B * N,)

    # Light correctness checks vs. a pure-JAX reference (tolerant to near-tie
    # argmin differences from MXU vs. XLA f32 rounding).
    z_flat = z.reshape(-1, embed_dim)
    d_full = (jnp.sum(z_flat ** 2, axis=1, keepdims=True)
              + jnp.sum(codebook ** 2, axis=1)[None, :]
              - 2.0 * z_flat @ codebook.T)
    d_min = jnp.min(d_full, axis=1)
    d_sel = jnp.take_along_axis(d_full, idx[:, None], axis=1)[:, 0]
    assert bool(jnp.all(d_sel <= d_min + 1e-3)), "kernel picked non-minimal code"
    zq_expect = z_flat + (codebook[idx] - z_flat)
    assert bool(jnp.allclose(z_q.reshape(-1, embed_dim), zq_expect, atol=1e-5))
    mse_ref = jnp.mean((codebook[idx] - z_flat) ** 2)
    assert bool(jnp.allclose(loss, (1.0 + beta) * mse_ref, rtol=1e-4, atol=1e-6))

    print("KERNEL_OK")
</pallas_src>

<mosaic_0001>
module attributes {stable_mosaic.version = 11 : i64} {
  func.func @_vq_kernel(%arg0: i32, %arg1: memref<256x32xf32, #tpu.memory_space<vmem>>, %arg2: memref<256x32xf32, #tpu.memory_space<vmem>>, %arg3: memref<256x1xf32, #tpu.memory_space<vmem>>, %arg4: memref<256x32xf32, #tpu.memory_space<vmem>>, %arg5: memref<1x1x256xi32, #tpu.memory_space<vmem>>, %arg6: memref<1x1x32xf32, #tpu.memory_space<vmem>>) attributes {dimension_semantics = [#tpu.dimension_semantics<parallel>], iteration_bounds = array<i64: 2>, scalar_prefetch = 0 : i64, scratch_operands = 0 : i64, tpu.core_type = #tpu.core_type<tc>, window_params = [{transform_indices = @transform_0, window_bounds = array<i64: 256, 32>}, {pipeline_mode = #tpu.pipeline_mode<synchronous>, transform_indices = @transform_1, window_bounds = array<i64: 256, 32>}, {pipeline_mode = #tpu.pipeline_mode<synchronous>, transform_indices = @transform_2, window_bounds = array<i64: 256, 1>}, {transform_indices = @transform_3, window_bounds = array<i64: 256, 32>}, {transform_indices = @transform_4, window_bounds = array<i64: 1, 1, 256>}, {transform_indices = @transform_5, window_bounds = array<i64: 1, 1, 32>}]} {
    %c0 = arith.constant 0 : index
    %c0_0 = arith.constant 0 : index
    %0 = vector.load %arg1[%c0, %c0_0] : memref<256x32xf32, #tpu.memory_space<vmem>>, vector<256x32xf32>
    %c0_1 = arith.constant 0 : index
    %c0_2 = arith.constant 0 : index
    %1 = vector.load %arg2[%c0_1, %c0_2] : memref<256x32xf32, #tpu.memory_space<vmem>>, vector<256x32xf32>
    %cst = arith.constant dense<0.000000e+00> : vector<256x256xf32>
    %2 = tpu.matmul %1, %0, %cst {dimension_numbers = #tpu.dot_dimension_numbers<[1], [1], [0], [0], [0, 0, 1, 0], [], []>} : vector<256x32xf32>, vector<256x32xf32>, vector<256x256xf32> -> vector<256x256xf32>
    %c0_3 = arith.constant 0 : index
    %c0_4 = arith.constant 0 : index
    %3 = vector.load %arg3[%c0_3, %c0_4] : memref<256x1xf32, #tpu.memory_space<vmem>>, vector<256x1xf32>
    %4 = vector.broadcast %3 : vector<256x1xf32> to vector<256x256xf32>
    %5 = arith.subf %4, %2 : vector<256x256xf32>
    %cst_5 = arith.constant dense<0x7F800000> : vector<256xf32>
    %6 = vector.multi_reduction <minimumf>, %5, %cst_5 [0] : vector<256x256xf32> to vector<256xf32>
    %7 = vector.shape_cast %6 : vector<256xf32> to vector<1x256xf32>
    %8 = tpu.iota {dimensions = array<i32: 0>} : vector<256x256xi32>
    %9 = vector.broadcast %7 : vector<1x256xf32> to vector<256x256xf32>
    %10 = arith.cmpf oeq, %5, %9 : vector<256x256xf32>
    %c256_i32 = arith.constant 256 : i32
    %11 = vector.broadcast %c256_i32 : i32 to vector<256x256xi32>
    %12 = arith.select %10, %8, %11 : vector<256x256xi1>, vector<256x256xi32>
    %cst_6 = arith.constant dense<2147483647> : vector<256xi32>
    %13 = vector.multi_reduction <minsi>, %12, %cst_6 [0] : vector<256x256xi32> to vector<256xi32>
    %14 = vector.shape_cast %13 : vector<256xi32> to vector<1x256xi32>
    %15 = vector.shape_cast %14 : vector<1x256xi32> to vector<1x1x256xi32>
    %c0_7 = arith.constant 0 : index
    %c0_8 = arith.constant 0 : index
    %c0_9 = arith.constant 0 : index
    %16 = vector.load %arg5[%c0_7, %c0_8, %c0_9] : memref<1x1x256xi32, #tpu.memory_space<vmem>>, vector<1x1x256xi32>
    tpu.vector_store %arg5[%c0_7, %c0_8, %c0_9], %15 {strides = array<i32>} : memref<1x1x256xi32, #tpu.memory_space<vmem>>, vector<1x1x256xi32>,
    %17 = vector.broadcast %14 : vector<1x256xi32> to vector<256x256xi32>
    %18 = arith.cmpi eq, %8, %17 : vector<256x256xi32>
    %19 = arith.extui %18 : vector<256x256xi1> to vector<256x256xi32>
    %20 = arith.sitofp %19 : vector<256x256xi32> to vector<256x256xf32>
    %cst_10 = arith.constant dense<0.000000e+00> : vector<256x32xf32>
    %21 = tpu.matmul %20, %1, %cst_10 {dimension_numbers = #tpu.dot_dimension_numbers<[0], [0], [1], [1], [0, 1, 1, 1], [], []>} : vector<256x256xf32>, vector<256x32xf32>, vector<256x32xf32> -> vector<256x32xf32>
    %c0_11 = arith.constant 0 : index
    %c0_12 = arith.constant 0 : index
    %22 = vector.load %arg4[%c0_11, %c0_12] : memref<256x32xf32, #tpu.memory_space<vmem>>, vector<256x32xf32>
    tpu.vector_store %arg4[%c0_11, %c0_12], %21 {strides = array<i32>} : memref<256x32xf32, #tpu.memory_space<vmem>>, vector<256x32xf32>,
    %23 = arith.subf %21, %0 : vector<256x32xf32>
    %24 = arith.mulf %23, %23 : vector<256x32xf32>
    %cst_13 = arith.constant dense<0.000000e+00> : vector<32xf32>
    %25 = vector.multi_reduction <add>, %24, %cst_13 [0] : vector<256x32xf32> to vector<32xf32>
    %26 = vector.shape_cast %25 : vector<32xf32> to vector<1x32xf32>
    %27 = vector.shape_cast %26 : vector<1x32xf32> to vector<1x1x32xf32>
    %c0_14 = arith.constant 0 : index
    %c0_15 = arith.constant 0 : index
    %c0_16 = arith.constant 0 : index
    %28 = vector.load %arg6[%c0_14, %c0_15, %c0_16] : memref<1x1x32xf32, #tpu.memory_space<vmem>>, vector<1x1x32xf32>
    tpu.vector_store %arg6[%c0_14, %c0_15, %c0_16], %27 {strides = array<i32>} : memref<1x1x32xf32, #tpu.memory_space<vmem>>, vector<1x1x32xf32>,
    return
  }
  func.func @transform_0(%arg0: i32) -> (i32, i32) {
    %c0_i32 = arith.constant 0 : i32
    %c0_i32_0 = arith.constant 0 : i32
    return %arg0, %c0_i32 : i32, i32
  }
  func.func @transform_1(%arg0: i32) -> (i32, i32) {
    %c0_i32 = arith.constant 0 : i32
    %c0_i32_0 = arith.constant 0 : i32
    %c0_i32_1 = arith.constant 0 : i32
    return %c0_i32, %c0_i32_0 : i32, i32
  }
  func.func @transform_2(%arg0: i32) -> (i32, i32) {
    %c0_i32 = arith.constant 0 : i32
    %c0_i32_0 = arith.constant 0 : i32
    %c0_i32_1 = arith.constant 0 : i32
    return %c0_i32, %c0_i32_0 : i32, i32
  }
  func.func @transform_3(%arg0: i32) -> (i32, i32) {
    %c0_i32 = arith.constant 0 : i32
    %c0_i32_0 = arith.constant 0 : i32
    return %arg0, %c0_i32 : i32, i32
  }
  func.func @transform_4(%arg0: i32) -> (i32, i32, i32) {
    %c0_i32 = arith.constant 0 : i32
    %c0_i32_0 = arith.constant 0 : i32
    %c0_i32_1 = arith.constant 0 : i32
    return %arg0, %c0_i32, %c0_i32_0 : i32, i32, i32
  }
  func.func @transform_5(%arg0: i32) -> (i32, i32, i32) {
    %c0_i32 = arith.constant 0 : i32
    %c0_i32_0 = arith.constant 0 : i32
    %c0_i32_1 = arith.constant 0 : i32
    return %arg0, %c0_i32, %c0_i32_0 : i32, i32, i32
  }
}

</mosaic_0001>

<bundles_post_ra>
// kernel: tpu_custom_call.1
= control target key start
LH: loop header
LB: loop body
LE: loop exit
PB: predicated region body
PF: predicated region fallthrough
CT: control target
= control target key end

     0   :  { %11 = vsyncpa [#allocation3], 0  ;;  %s4441_s0 = inlined_call_operand.vmem [shape: f32[512,32], index: 0, kind: input, shape index: {}]   ;;  %s4442_s1 = inlined_call_operand.vmem [shape: f32[256,32], index: 1, kind: input, shape index: {}]   ;;  %s4443_s2 = inlined_call_operand.vmem [shape: f32[256,1], index: 2, kind: input, shape index: {}]   ;;  %s4444_s3 = inlined_call_operand.vmem [shape: f32[512,32], index: 3, kind: output, shape index: {0}]   ;;  %s4445_s4 = inlined_call_operand.hbm [shape: s32[2,1,256], index: 4, kind: output, shape index: {1}]   ;;  %s4446_s5 = inlined_call_operand.hbm [shape: f32[2,1,32], index: 5, kind: output, shape index: {2}]  }
   0x1   :  { %13 = vsyncpa [#allocation3 + $0x1], 0 }
   0x2   :  { %14 = vsyncpa [#allocation5], 0 }
   0x3   :  { %16 = vsyncpa [#allocation5 + $0x1], 0  ;;  %s2847_s18 = smov 0   ;;  %s2849_s19 = smov 0  }
   0x4   :  { %s2851_s20 = smov 0   ;;  %s2853_s21 = smov 0  }
   0x5 LB: > { %s2868_s22 = sadd.s32 4294967295, %s2810_s21   ;;  %s2239_s23 = sadd.s32 4294967294, %s2810_s21   ;;  %s2810_s21 = sphi %s2853_s21, %s4698_s21   ;;  %s2806_s20 = sphi %s2851_s20, %s4697_s20   ;;  %s2802_s19 = sphi %s2849_s19, %s4696_s19   ;;  %s2798_s18 = sphi %s2847_s18, %s4695_s18  }
   0x6   : > { %s2872_s24 = sadd.s32 1, %s2810_s21   ;;  %s123_s25 = sadd.s32 1, %s2806_s20 }
   0x7   : > { %s120_s26 = ssub.s32 %s2810_s21, %s2872_s24  ;;  %p133_p0 = scmp.ne.s32.totalorder %s2806_s20, %s2802_s19 }
   0x8   : > { %p121_p1 = scmp.eq.s32.totalorder %s120_s26, 0  ;;  %p134_p2 = scmp.eq.s32.totalorder %s2868_s22, 1 }
   0x9   : > { %p139_p3 = scmp.ne.s32.totalorder %s2802_s19, %s2798_s18  ;;  %p140_p4 = scmp.eq.s32.totalorder %s2239_s23, 1 }
   0xa   : > { %s2883_s27 = scalar_select %p121_p1, %s2806_s20, %s123_s25  }
   0xb   : > { %p2885_p5 = por %p134_p2, %p133_p0  ;;  %p2889_p6 = por %p140_p4, %p139_p3 }
   0xc   : > { %p2242_p7 = scmp.ge.s32.totalorder %s2810_s21, 1  ;;  %p199_p8 = scmp.lt.s32.totalorder %s2810_s21, 3 }
   0xe   : > { %p200_p9 = pnand %p2242_p7, %p199_p8 }
  0x10   : > { %203 = sbr.rel (%p200_p9) target bundleno = 1104 (0x450), region = 32 }
  0x15   : > { %s2244_s30 = sshll.u32 %s2868_s22, 5  ;;  %vm4503_vm0 = vcmask 261120   ;;  %v731_v22 = vld [vmem:[%s4443_s2] sm:$0xff]  ;;  %v2812_v25 = vmov 0   ;;  %v732_v28 = vld [vmem:[%s4443_s2 + $0x8] sm:$0xff]  ;;  %v733_v33 = vld [vmem:[%s4443_s2 + $0x10] sm:$0xff] }
  0x16   : > { %p237_p10 = scmp.lt.s32.totalorder %s2244_s30, 63  ;;  %2569 = vset.pattern.permute.xlu0 %v2812_v25  ;;  %2570 = vset.pattern.permute.xlu1 %v2812_v25  ;;  %v2982_v36 = vld [vmem:[%s4442_s1] sm:$0xff]  ;;  %v734_v37 = vld [vmem:[%s4443_s2 + $0x18] sm:$0xff]  ;;  %v2994_v38 = vld [vmem:[%s4442_s1 + $0x8] sm:$0xff]  ;;  %s4111_s7 = sand.u32 1, %s2802_s19  }
  0x17   : > { %765 = vperm.xlu0 %2569, %v731_v22   ;;  %2571 = vset.pattern.permute.xlu2 %v2812_v25  ;;  %v3003_v39 = vld [vmem:[%s4442_s1 + $0x10] sm:$0xff]  ;;  %v3012_v40 = vld [vmem:[%s4442_s1 + $0x18] sm:$0xff]  ;;  %v284_v42 = vld [vmem:[%s4442_s1 + $0x20] sm:$0xff]  ;;  %s2243_s8 = sshll.u32 %s4111_s7, 1  ;;  %s2091_s23 = scalar_lea.sflag [#allocation3], %s4111_s7 }
  0x18   : > { %s4700_s30 = smov (!%p237_p10, %s2244_s30), 63  ;;  %775 = vperm.xlu1 %2570, %v733_v33   ;;  %v737_v41 = vld [vmem:[%s4443_s2 + $0x30] sm:$0xff]  ;;  %v735_v43 = vld [vmem:[%s4443_s2 + $0x20] sm:$0xff]  ;;  %v738_v44 = vld [vmem:[%s4443_s2 + $0x38] sm:$0xff]  ;;  %s4156_s10 = scalar_lea.vmem [#allocation2], %s2243_s8 }
  0x19   : > { %s2245_s6 = sshll.u32 %s4700_s30, 3  ;;  %785 = vperm.xlu2 %2571, %v735_v43   ;;  %v285_v45 = vld [vmem:[%s4442_s1 + $0x28] sm:$0xff]  ;;  %v286_v47 = vld [vmem:[%s4442_s1 + $0x30] sm:$0xff]  ;;  %v287_v49 = vld [vmem:[%s4442_s1 + $0x38] sm:$0xff]  ;;  %s2409_s30 = sshll.u32 %s2868_s22, 1 }
  0x1a   : > { %s2904_s9 = scalar_lea.vmem %s4441_s0, %s2245_s6  ;;  %v736_v46 = vld [vmem:[%s4443_s2 + $0x28] sm:$0xff]  ;;  %v741_v50 = vld [vmem:[%s4443_s2 + $0x50] sm:$0xff]  ;;  %v288_v51 = vld [vmem:[%s4442_s1 + $0x40] sm:$0xff]  ;;  %s4262_s13 = scalar_lea.vmem %s4444_s3, %s2245_s6 }
  0x1b   : > { %v263_v0 = vld [vmem:[%s2904_s9 + $0x78] sm:$0xff]  ;;  %v262_v2 = vld [vmem:[%s2904_s9 + $0x70] sm:$0xff]  ;;  %v261_v4 = vld [vmem:[%s2904_s9 + $0x68] sm:$0xff]  ;;  %s2109_s15 = scalar_lea.hbm %s4445_s4, %s2409_s30  ;;  %s2111_s16 = sshll.u32 %s4156_s10, 4  ;;  %s2112_s16 = int_to_ptr.vmem [resolvable:$true] %s2111_s16 }
  0x1c   : > { %v279_v1 = vld [vmem:[%s2904_s9 + $0xf8] sm:$0xff]  ;;  %2248 = vmatpush.xpose.msk.msra.mxu0 %vm4503_vm0, %v263_v0  ;;  %v278_v3 = vld [vmem:[%s2904_s9 + $0xf0] sm:$0xff]  ;;  %v277_v5 = vld [vmem:[%s2904_s9 + $0xe8] sm:$0xff]  ;;  %s2113_s17 = sshll.u32 %s2109_s15, 4  ;;  %s2736_s12 = scalar_lea.hbm %s4445_s4, 4  ;;  %s2114_s17 = int_to_ptr.hbm [resolvable:$true] %s2113_s17 }
  0x1d   : > { %2296 = vmatpush.xpose.msk.msra.mxu1 %vm4503_vm0, %v279_v1  ;;  %v260_v6 = vld [vmem:[%s2904_s9 + $0x60] sm:$0xff]  ;;  %v259_v8 = vld [vmem:[%s2904_s9 + $0x58] sm:$0xff]  ;;  %v258_v10 = vld [vmem:[%s2904_s9 + $0x50] sm:$0xff]  ;;  %s2730_s25 = sshra.s32 %s2114_s17, 4  ;;  %s2731_s25 = int_to_ptr.hbm [resolvable:$true] %s2730_s25 }
  0x1e   : > { %v276_v7 = vld [vmem:[%s2904_s9 + $0xe0] sm:$0xff]  ;;  %v275_v9 = vld [vmem:[%s2904_s9 + $0xd8] sm:$0xff]  ;;  %v274_v11 = vld [vmem:[%s2904_s9 + $0xd0] sm:$0xff]  ;;  %s2732_s26 = scalar_lea.hbm %s2731_s25, 2  ;;  %p2737_p0 = scmp.lt.s32.totalorder %s2731_s25, %s4445_s4 }
  0x1f   : > { %v257_v12 = vld [vmem:[%s2904_s9 + $0x48] sm:$0xff]  ;;  %v256_v14 = vld [vmem:[%s2904_s9 + $0x40] sm:$0xff]  ;;  %v255_v16 = vld [vmem:[%s2904_s9 + $0x38] sm:$0xff]  ;;  %770 = vperm.xlu0 %2569, %v732_v28   ;;  %p2733_p11 = scmp.ne.s32.totalorder %s2731_s25, %s2732_s26  ;;  %p2738_p1 = scmp.lt.s32.totalorder %s2736_s12, %s2732_s26 }
  0x20   : > { %2249 = vmatpush.xpose.msk.msra.mxu0 %vm4503_vm0, %v262_v2  ;;  %v273_v13 = vld [vmem:[%s2904_s9 + $0xc8] sm:$0xff]  ;;  %v272_v15 = vld [vmem:[%s2904_s9 + $0xc0] sm:$0xff]  ;;  %v271_v17 = vld [vmem:[%s2904_s9 + $0xb8] sm:$0xff]  ;;  %780 = vperm.xlu1 %2570, %v734_v37  }
  0x21   : > { %2297 = vmatpush.xpose.msk.msra.mxu1 %vm4503_vm0, %v278_v3  ;;  %v254_v18 = vld [vmem:[%s2904_s9 + $0x30] sm:$0xff]  ;;  %v253_v20 = vld [vmem:[%s2904_s9 + $0x28] sm:$0xff]  ;;  %v252_v23 = vld [vmem:[%s2904_s9 + $0x20] sm:$0xff]  ;;  %790 = vperm.xlu2 %2571, %v736_v46   ;;  %p2734_p12 = pnand %p2733_p11, %p2885_p5  ;;  %p2739_p2 = por %p2738_p1, %p2737_p0 }
  0x22   : > { %v270_v19 = vld [vmem:[%s2904_s9 + $0xb0] sm:$0xff]  ;;  %v269_v21 = vld [vmem:[%s2904_s9 + $0xa8] sm:$0xff]  ;;  %v268_v24 = vld [vmem:[%s2904_s9 + $0xa0] sm:$0xff] }
  0x23   : > { %v251_v26 = vld [vmem:[%s2904_s9 + $0x18] sm:$0xff]  ;;  %v250_v29 = vld [vmem:[%s2904_s9 + $0x10] sm:$0xff]  ;;  %v249_v31 = vld [vmem:[%s2904_s9 + $0x8] sm:$0xff]  ;;  %p2735_p13 = pneg %p2734_p12 }
  0x24   : > { %2250 = vmatpush.xpose.msk.msra.mxu0 %vm4503_vm0, %v261_v4  ;;  %v267_v27 = vld [vmem:[%s2904_s9 + $0x98] sm:$0xff]  ;;  %v266_v30 = vld [vmem:[%s2904_s9 + $0x90] sm:$0xff]  ;;  %v265_v32 = vld [vmem:[%s2904_s9 + $0x88] sm:$0xff] }
  0x25   : > { %2298 = vmatpush.xpose.msk.msra.mxu1 %vm4503_vm0, %v277_v5  ;;  %v248_v34 = vld [vmem:[%s2904_s9] sm:$0xff]  ;;  %v740_v48 = vld [vmem:[%s4443_s2 + $0x48] sm:$0xff]  ;;  %v290_v55 = vld [vmem:[%s4442_s1 + $0x50] sm:$0xff]  ;;  %p2740_p3 = pnand %p2739_p2, %p2735_p13 }
  0x26   : > { %v264_v35 = vld [vmem:[%s2904_s9 + $0x80] sm:$0xff]  ;;  %v289_v53 = vld [vmem:[%s4442_s1 + $0x48] sm:$0xff]  ;;  %v295_v57 = vld [vmem:[%s4442_s1 + $0x78] sm:$0xff] }
  0x27   : > { %795 = vperm.xlu0 %2569, %v737_v41   ;;  %v739_v52 = vld [vmem:[%s4443_s2 + $0x40] sm:$0xff]  ;;  %v744_v56 = vld [vmem:[%s4443_s2 + $0x68] sm:$0xff]  ;;  %1692 = vmatpush.msra.mxu2 %v295_v57  ;;  %v294_v58 = vld [vmem:[%s4442_s1 + $0x70] sm:$0xff] }
  0x28   : > { %2251 = vmatpush.xpose.msk.msra.mxu0 %vm4503_vm0, %v260_v6  ;;  %800 = vperm.xlu1 %2570, %v738_v44   ;;  %v743_v54 = vld [vmem:[%s4443_s2 + $0x60] sm:$0xff]  ;;  %v293_v59 = vld [vmem:[%s4442_s1 + $0x68] sm:$0xff]  ;;  %v291_v60 = vld [vmem:[%s4442_s1 + $0x58] sm:$0xff] }
  0x29   : > { %2299 = vmatpush.xpose.msk.msra.mxu1 %vm4503_vm0, %v276_v7  ;;  %805 = vperm.xlu2 %2571, %v739_v52   ;;  %v292_v61 = vld [vmem:[%s4442_s1 + $0x60] sm:$0xff]  ;;  %v742_v62 = vld [vmem:[%s4443_s2 + $0x58] sm:$0xff]  ;;  %v745_v1 = vld [vmem:[%s4443_s2 + $0x70] sm:$0xff] }
  0x2a   : > { %1693 = vmatpush.msra.mxu2 %v294_v58  ;;  %v746_v63 = vld [vmem:[%s4443_s2 + $0x78] sm:$0xff]  ;;  %v747_v0 = vld [vmem:[%s4443_s2 + $0x80] sm:$0xff]  ;;  %v749_v3 = vld [vmem:[%s4443_s2 + $0x90] sm:$0xff] }
  0x2b   : > { %v750_v2 = vld [vmem:[%s4443_s2 + $0x98] sm:$0xff]  ;;  %v753_v4 = vld [vmem:[%s4443_s2 + $0xb0] sm:$0xff]  ;;  %v752_v5 = vld [vmem:[%s4443_s2 + $0xa8] sm:$0xff] }
  0x2c   : > { %2252 = vmatpush.xpose.msk.msra.mxu0 %vm4503_vm0, %v259_v8  ;;  %1694 = vmatpush.msra.mxu2 %v293_v59  ;;  %v3138_v8 = vld [vmem:[%s4442_s1 + $0x80] sm:$0xff]  ;;  %v3182_v22 = vld [vmem:[%s4442_s1 + $0x90] sm:$0xff]  ;;  %v762_v25 = vld [vmem:[%s4443_s2 + $0xf8] sm:$0xff] }
  0x2d   : > { %2300 = vmatpush.xpose.msk.msra.mxu1 %vm4503_vm0, %v275_v9  ;;  %v756_v9 = vld [vmem:[%s4443_s2 + $0xc8] sm:$0xff] }
  0x2e   : > { %1695 = vmatpush.msra.mxu2 %v292_v61  ;;  %v3243_v46 = vld [vmem:[%s4442_s1 + $0xa8] sm:$0xff] }
  0x2f   : > { %810 = vperm.xlu0 %2569, %v740_v48  }
  0x30   : > { %2253 = vmatpush.xpose.msk.msra.mxu0 %vm4503_vm0, %v258_v10  ;;  %815 = vperm.xlu1 %2570, %v741_v50   ;;  %v755_v10 = vld [vmem:[%s4443_s2 + $0xc0] sm:$0xff] }
  0x31   : > { %2301 = vmatpush.xpose.msk.msra.mxu1 %vm4503_vm0, %v274_v11  ;;  %820 = vperm.xlu2 %2571, %v742_v62  }
  0x32   : > { %1696 = vmatpush.msra.mxu2 %v291_v60 }
  0x34   : > { %2254 = vmatpush.xpose.msk.msra.mxu0 %vm4503_vm0, %v257_v12  ;;  %1697 = vmatpush.msra.mxu2 %v290_v55 }
  0x35   : > { %2302 = vmatpush.xpose.msk.msra.mxu1 %vm4503_vm0, %v273_v13  ;;  %v3155_v13 = vld [vmem:[%s4442_s1 + $0x88] sm:$0xff] }
  0x36   : > { %1698 = vmatpush.msra.mxu2 %v289_v53 }
  0x37   : > { %825 = vperm.xlu0 %2569, %v743_v54  }
  0x38   : > { %2255 = vmatpush.xpose.msk.msra.mxu0 %vm4503_vm0, %v256_v14  ;;  %830 = vperm.xlu1 %2570, %v744_v56   ;;  %v748_v14 = vld [vmem:[%s4443_s2 + $0x88] sm:$0xff] }
  0x39   : > { %2303 = vmatpush.xpose.msk.msra.mxu1 %vm4503_vm0, %v272_v15  ;;  %1699 = vmatpush.msra.mxu2 %v288_v51  ;;  %v759_v15 = vld [vmem:[%s4443_s2 + $0xe0] sm:$0xff]  ;;  %v760_v56 = vld [vmem:[%s4443_s2 + $0xe8] sm:$0xff] }
  0x3a   : > { %835 = vperm.xlu2 %2571, %v745_v1  }
  0x3b   : > { %1700 = vmatpush.msra.mxu2 %v287_v49 }
  0x3c   : > { %2256 = vmatpush.xpose.msk.msra.mxu0 %vm4503_vm0, %v255_v16  ;;  %v758_v16 = vld [vmem:[%s4443_s2 + $0xd8] sm:$0xff] }
  0x3d   : > { %2304 = vmatpush.xpose.msk.msra.mxu1 %vm4503_vm0, %v271_v17  ;;  %1701 = vmatpush.msra.mxu2 %v286_v47 }
  0x3f   : > { %840 = vperm.xlu0 %2569, %v746_v63   ;;  %1702 = vmatpush.msra.mxu2 %v285_v45 }
  0x40   : > { %2257 = vmatpush.xpose.msk.msra.mxu0 %vm4503_vm0, %v254_v18  ;;  %845 = vperm.xlu1 %2570, %v747_v0  }
  0x41   : > { %2305 = vmatpush.xpose.msk.msra.mxu1 %vm4503_vm0, %v270_v19  ;;  %1703 = vmatpush.msra.mxu2 %v284_v42 }
  0x42   : > { %850 = vperm.xlu2 %2571, %v748_v14  }
  0x43   : > { %1704 = vmatpush.msra.mxu2 %v3012_v40 }
  0x44   : > { %2258 = vmatpush.xpose.msk.msra.mxu0 %vm4503_vm0, %v253_v20 }
  0x45   : > { %2306 = vmatpush.xpose.msk.msra.mxu1 %vm4503_vm0, %v269_v21  ;;  %1705 = vmatpush.msra.mxu2 %v3003_v39 }
  0x47   : > { %1706 = vmatpush.msra.mxu2 %v2994_v38  ;;  %855 = vperm.xlu0 %2569, %v749_v3  }
  0x48   : > { %2259 = vmatpush.xpose.msk.msra.mxu0 %vm4503_vm0, %v252_v23  ;;  %860 = vperm.xlu1 %2570, %v750_v2   ;;  %v3285_v2 = vld [vmem:[%s4442_s1 + $0xc0] sm:$0xff] }
  0x49   : > { %2307 = vmatpush.xpose.msk.msra.mxu1 %vm4503_vm0, %v268_v24  ;;  %1707 = vmatpush.msra.mxu2 %v2982_v36 }
  0x4c   : > { %2260 = vmatpush.xpose.msk.msra.mxu0 %vm4503_vm0, %v251_v26  ;;  %v761_v26 = vld [vmem:[%s4443_s2 + $0xf0] sm:$0xff] }
  0x4d   : > { %2308 = vmatpush.xpose.msk.msra.mxu1 %vm4503_vm0, %v267_v27 }
  0x4f   : > { %870 = vperm.xlu0 %2569, %v752_v5  }
  0x50   : > { %2261 = vmatpush.xpose.msk.msra.mxu0 %vm4503_vm0, %v250_v29  ;;  %875 = vperm.xlu1 %2570, %v753_v4  }
  0x51   : > { %2309 = vmatpush.xpose.msk.msra.mxu1 %vm4503_vm0, %v266_v30 }
  0x54   : > { %2262 = vmatpush.xpose.msk.msra.mxu0 %vm4503_vm0, %v249_v31 }
  0x55   : > { %2310 = vmatpush.xpose.msk.msra.mxu1 %vm4503_vm0, %v265_v32  ;;  %v3211_v32 = vld [vmem:[%s4442_s1 + $0x98] sm:$0xff] }
  0x57   : > { %885 = vperm.xlu0 %2569, %v755_v10  }
  0x58   : > { %2263 = vmatpush.xpose.msk.msra.mxu0 %vm4503_vm0, %v248_v34  ;;  %890 = vperm.xlu1 %2570, %v756_v9  }
  0x59   : > { %2311 = vmatpush.xpose.msk.msra.mxu1 %vm4503_vm0, %v264_v35  ;;  %v751_v35 = vld [vmem:[%s4443_s2 + $0xa0] sm:$0xff] }
  0x5a   : > { %865 = vperm.xlu2 %2571, %v751_v35  }
  0x5b   : > { %2264 = vmatmul.msk.f32.vlgmr.msra.gmra.mxu0 %vm4503_vm0, %v2982_v36 }
  0x5c   : > { %2312 = vmatmul.msk.f32.vlgmr.msra.gmra.mxu1 %vm4503_vm0, %v2982_v36 }
  0x5f   : > { %900 = vperm.xlu0 %2569, %v758_v16  }
  0x60   : > { %905 = vperm.xlu1 %2570, %v759_v15  }
  0x63   : > { %2265 = vmatmul.msk.f32.gmra.mxu0 %vm4503_vm0, %v2994_v38 }
  0x64   : > { %2313 = vmatmul.msk.f32.gmra.mxu1 %vm4503_vm0, %v2994_v38 }
  0x67   : > { %915 = vperm.xlu0 %2569, %v761_v26  }
  0x68   : > { %920 = vperm.xlu1 %2570, %v762_v25  }
  0x6b   : > { %2266 = vmatmul.msk.f32.gmra.mxu0 %vm4503_vm0, %v3003_v39 }
  0x6c   : > { %2314 = vmatmul.msk.f32.gmra.mxu1 %vm4503_vm0, %v3003_v39  ;;  %v3228_v39 = vld [vmem:[%s4442_s1 + $0xa0] sm:$0xff] }
  0x73   : > { %2267 = vmatmul.msk.f32.gmra.mxu0 %vm4503_vm0, %v3012_v40  ;;  %v786_v36 = vpop.permute.xlu2 %785 }
  0x74   : > { %2315 = vmatmul.msk.f32.gmra.mxu1 %vm4503_vm0, %v3012_v40 }
  0x7b   : > { %2268 = vmatmul.msk.f32.gmra.mxu0 %vm4503_vm0, %v284_v42  ;;  %v791_v43 = vpop.permute.xlu2 %790 }
  0x7c   : > { %2316 = vmatmul.msk.f32.gmra.mxu1 %vm4503_vm0, %v284_v42  ;;  %v754_v42 = vld [vmem:[%s4443_s2 + $0xb8] sm:$0xff] }
  0x7d   : > { %880 = vperm.xlu2 %2571, %v754_v42  }
  0x83   : > { %2269 = vmatmul.msk.f32.gmra.mxu0 %vm4503_vm0, %v285_v45  ;;  %v806_v63 = vpop.permute.xlu2 %805 }
  0x84   : > { %2317 = vmatmul.msk.f32.gmra.mxu1 %vm4503_vm0, %v285_v45 }
  0x89   : > { %v3170_v17 = vpop.permute.xlu0 %765 }
  0x8a   : > { %v3172_v18 = vpop.permute.xlu1 %775 }
  0x8b   : > { %2270 = vmatmul.msk.f32.gmra.mxu0 %vm4503_vm0, %v286_v47 }
  0x8c   : > { %2318 = vmatmul.msk.f32.gmra.mxu1 %vm4503_vm0, %v286_v47 }
  0x91   : > { %v3199_v27 = vpop.permute.xlu0 %770 }
  0x92   : > { %v3204_v29 = vpop.permute.xlu1 %780 }
  0x93   : > { %2271 = vmatmul.msk.f32.gmra.mxu0 %vm4503_vm0, %v287_v49 }
  0x94   : > { %2319 = vmatmul.msk.f32.gmra.mxu1 %vm4503_vm0, %v287_v49  ;;  %v757_v49 = vld [vmem:[%s4443_s2 + $0xd0] sm:$0xff] }
  0x95   : > { %895 = vperm.xlu2 %2571, %v757_v49  }
  0x99   : > { %v796_v50 = vpop.permute.xlu0 %795 }
  0x9b   : > { %2272 = vmatmul.msk.f32.gmra.mxu0 %vm4503_vm0, %v288_v51 }
  0x9c   : > { %2320 = vmatmul.msk.f32.gmra.mxu1 %vm4503_vm0, %v288_v51 }
  0x9d   : > { %910 = vperm.xlu2 %2571, %v760_v56  }
  0xa3   : > { %2273 = vmatmul.msk.f32.gmra.mxu0 %vm4503_vm0, %v289_v53 }
  0xa4   : > { %2321 = vmatmul.msk.f32.gmra.mxu1 %vm4503_vm0, %v289_v53  ;;  %v3258_v53 = vld [vmem:[%s4442_s1 + $0xb0] sm:$0xff] }
  0xab   : > { %2274 = vmatmul.msk.f32.gmra.mxu0 %vm4503_vm0, %v290_v55 }
  0xac   : > { %2322 = vmatmul.msk.f32.gmra.mxu1 %vm4503_vm0, %v290_v55 }
  0xb3   : > { %2275 = vmatmul.msk.f32.gmra.mxu0 %vm4503_vm0, %v291_v60 }
  0xb4   : > { %2323 = vmatmul.msk.f32.gmra.mxu1 %vm4503_vm0, %v291_v60  ;;  %v3273_v60 = vld [vmem:[%s4442_s1 + $0xb8] sm:$0xff] }
  0xbb   : > { %2276 = vmatmul.msk.f32.gmra.mxu0 %vm4503_vm0, %v292_v61 }
  0xbc   : > { %2324 = vmatmul.msk.f32.gmra.mxu1 %vm4503_vm0, %v292_v61 }
  0xc3   : > { %2277 = vmatmul.msk.f32.gmra.mxu0 %vm4503_vm0, %v293_v59 }
  0xc4   : > { %2325 = vmatmul.msk.f32.gmra.mxu1 %vm4503_vm0, %v293_v59 }
  0xcb   : > { %2278 = vmatmul.msk.f32.gmra.mxu0 %vm4503_vm0, %v294_v58 }
  0xcc   : > { %2326 = vmatmul.msk.f32.gmra.mxu1 %vm4503_vm0, %v294_v58 }
  0xd3   : > { %2279 = vmatmul.msk.f32.gmra.mxu0 %vm4503_vm0, %v295_v57 }
  0xd4   : > { %2327 = vmatmul.msk.f32.gmra.mxu1 %vm4503_vm0, %v295_v57  ;;  %v801_v57 = vpop.permute.xlu1 %800 }
  0xd8   : > { %v3133_v6 = vpop.f32.mrf.mxu0 }
  0xd9   : > { %v635_v7 = vpop.f32.mrf.mxu1  ;;  %v3307_v14 = vsub.f32 %v3170_v17, %v3133_v6 }
  0xda   : > { %v3175_v19 = vsub.f32 %v3170_v17, %v635_v7  ;;  %v811_v7 = vpop.permute.xlu0 %810 }
  0xdb   : > { %2280 = vmatmul.msk.f32.gmra.mxu0 %vm4503_vm0, %v3138_v8 }
  0xdc   : > { %2328 = vmatmul.msk.f32.gmra.mxu1 %vm4503_vm0, %v3138_v8  ;;  %v816_v25 = vpop.permute.xlu1 %815 }
  0xe0   : > { %v3150_v11 = vpop.f32.mrf.mxu0 }
  0xe1   : > { %v638_v12 = vpop.f32.mrf.mxu1 }
  0xe2   : > { %v3202_v28 = vsub.f32 %v3199_v27, %v638_v12  ;;  %v3303_v12 = vld [vmem:[%s4442_s1 + $0xc8] sm:$0xff] }
  0xe3   : > { %2281 = vmatmul.msk.f32.gmra.mxu0 %vm4503_vm0, %v3155_v13 }
  0xe4   : > { %2329 = vmatmul.msk.f32.gmra.mxu1 %vm4503_vm0, %v3155_v13 }
  0xe8   : > { %v3177_v20 = vpop.f32.mrf.mxu0 }
  0xe9   : > { %v641_v21 = vpop.f32.mrf.mxu1  ;;  %v3298_v5 = vsub.f32 %v3172_v18, %v3177_v20 }
  0xea   : > { %v3185_v23 = vsub.f32 %v3172_v18, %v641_v21 }
  0xeb   : > { %2282 = vmatmul.msk.f32.gmra.mxu0 %vm4503_vm0, %v3182_v22  ;;  %v987_v18 = vmin.f32 %v3307_v14, %v3298_v5 }
  0xec   : > { %v1024_v24 = vmin.f32 %v3175_v19, %v3185_v23  ;;  %2330 = vmatmul.msk.f32.gmra.mxu1 %vm4503_vm0, %v3182_v22 }
  0xf0   : > { %v3206_v30 = vpop.f32.mrf.mxu0 }
  0xf1   : > { %v644_v31 = vpop.f32.mrf.mxu1 }
  0xf2   : > { %v3214_v33 = vsub.f32 %v3204_v29, %v644_v31  ;;  %v3334_v31 = vsub.f32 %v3199_v27, %v3150_v11 }
  0xf3   : > { %2283 = vmatmul.msk.f32.gmra.mxu0 %vm4503_vm0, %v3211_v32 }
  0xf4   : > { %v1025_v34 = vmin.f32 %v3202_v28, %v3214_v33  ;;  %2331 = vmatmul.msk.f32.gmra.mxu1 %vm4503_vm0, %v3211_v32 }
  0xf8   : > { %v534_v37 = vpop.f32.mrf.mxu0 }
  0xf9   : > { %v647_v38 = vpop.f32.mrf.mxu1  ;;  %v3309_v15 = vsub.f32 %v786_v36, %v534_v37 }
  0xfa   : > { %v3230_v40 = vsub.f32 %v786_v36, %v647_v38  ;;  %v306_v36 = vld [vmem:[%s4442_s1 + $0xd0] sm:$0xff] }
  0xfb   : > { %2284 = vmatmul.msk.f32.gmra.mxu0 %vm4503_vm0, %v3228_v39  ;;  %v989_v6 = vmin.f32 %v987_v18, %v3309_v15 }
  0xfc   : > { %v1026_v41 = vmin.f32 %v1024_v24, %v3230_v40  ;;  %2332 = vmatmul.msk.f32.gmra.mxu1 %vm4503_vm0, %v3228_v39  ;;  %v3329_v24 = vsub.f32 %v3204_v29, %v3206_v30 }
  0xfe   : > { %v988_v30 = vmin.f32 %v3334_v31, %v3329_v24 }
 0x100   : > { %v537_v44 = vpop.f32.mrf.mxu0 }
 0x101   : > { %v650_v45 = vpop.f32.mrf.mxu1  ;;  %v3339_v37 = vsub.f32 %v791_v43, %v537_v44 }
 0x102   : > { %v3245_v47 = vsub.f32 %v791_v43, %v650_v45  ;;  %v821_v45 = vpop.permute.xlu2 %820 }
 0x103   : > { %2285 = vmatmul.msk.f32.gmra.mxu0 %vm4503_vm0, %v3243_v46  ;;  %v990_v43 = vmin.f32 %v988_v30, %v3339_v37 }
 0x104   : > { %v1027_v48 = vmin.f32 %v1025_v34, %v3245_v47  ;;  %2333 = vmatmul.msk.f32.gmra.mxu1 %vm4503_vm0, %v3243_v46 }
 0x108   : > { %v540_v51 = vpop.f32.mrf.mxu0 }
 0x109   : > { %v653_v52 = vpop.f32.mrf.mxu1  ;;  %v3315_v20 = vsub.f32 %v796_v50, %v540_v51  ;;  %v307_v51 = vld [vmem:[%s4442_s1 + $0xd8] sm:$0xff] }
 0x10a   : > { %v3260_v54 = vsub.f32 %v796_v50, %v653_v52 }
 0x10b   : > { %2286 = vmatmul.msk.f32.gmra.mxu0 %vm4503_vm0, %v3258_v53  ;;  %v991_v26 = vmin.f32 %v989_v6, %v3315_v20  ;;  %v831_v6 = vpop.permute.xlu1 %830 }
 0x10c   : > { %4523 = vst [vmem:[#allocation8_spill] sm:$0xff] %v3260_v54  ;;  %v1028_v55 = vmin.f32 %v1026_v41, %v3260_v54  ;;  %2334 = vmatmul.msk.f32.gmra.mxu1 %vm4503_vm0, %v3258_v53 }
 0x110   : > { %v543_v58 = vpop.f32.mrf.mxu0 }
 0x111   : > { %v656_v59 = vpop.f32.mrf.mxu1  ;;  %v3348_v42 = vsub.f32 %v801_v57, %v543_v58 }
 0x112   : > { %v3275_v61 = vsub.f32 %v801_v57, %v656_v59  ;;  %v311_v59 = vld [vmem:[%s4442_s1 + $0xf8] sm:$0xff] }
 0x113   : > { %2287 = vmatmul.msk.f32.gmra.mxu0 %vm4503_vm0, %v3273_v60  ;;  %1805 = vmatpush.msra.mxu3 %v311_v59 }
 0x114   : > { %4524 = vst [vmem:[#allocation9_spill] sm:$0xff] %v3275_v61  ;;  %v1029_v62 = vmin.f32 %v1027_v48, %v3275_v61  ;;  %2335 = vmatmul.msk.f32.gmra.mxu1 %vm4503_vm0, %v3273_v60  ;;  %v992_v48 = vmin.f32 %v990_v43, %v3348_v42 }
 0x118   : > { %v546_v0 = vpop.f32.mrf.mxu0 }
 0x119   : > { %v659_v1 = vpop.f32.mrf.mxu1  ;;  %v3325_v17 = vsub.f32 %v806_v63, %v546_v0  ;;  %v309_v0 = vld [vmem:[%s4442_s1 + $0xe8] sm:$0xff] }
 0x11a   : > { %v3287_v3 = vsub.f32 %v806_v63, %v659_v1  ;;  %v826_v63 = vpop.permute.xlu0 %825 }
 0x11b   : > { %2288 = vmatmul.msk.f32.gmra.mxu0 %vm4503_vm0, %v3285_v2  ;;  %v993_v38 = vmin.f32 %v991_v26, %v3325_v17 }
 0x11c   : > { %4525 = vst [vmem:[#allocation10_spill] sm:$0xff] %v3287_v3  ;;  %v3290_v4 = vmin.f32 %v1028_v55, %v3287_v3  ;;  %2336 = vmatmul.msk.f32.gmra.mxu1 %vm4503_vm0, %v3285_v2 }
 0x120   : > { %v549_v9 = vpop.f32.mrf.mxu0 }
 0x121   : > { %v662_v10 = vpop.f32.mrf.mxu1  ;;  %v3356_v44 = vsub.f32 %v811_v7, %v549_v9 }
 0x122   : > { %v3311_v16 = vsub.f32 %v811_v7, %v662_v10  ;;  %v308_v7 = vld [vmem:[%s4442_s1 + $0xe0] sm:$0xff] }
 0x123   : > { %2289 = vmatmul.msk.f32.gmra.mxu0 %vm4503_vm0, %v3303_v12  ;;  %v994_v52 = vmin.f32 %v992_v48, %v3356_v44 }
 0x124   : > { %4526 = vst [vmem:[#allocation11_spill] sm:$0xff] %v3311_v16  ;;  %v3318_v21 = vmin.f32 %v1029_v62, %v3311_v16  ;;  %2337 = vmatmul.msk.f32.gmra.mxu1 %vm4503_vm0, %v3303_v12  ;;  %v310_v62 = vld [vmem:[%s4442_s1 + $0xf0] sm:$0xff] }
 0x125   : > { %1806 = vmatpush.msra.mxu3 %v310_v62 }
 0x127   : > { %1807 = vmatpush.msra.mxu3 %v309_v0 }
 0x128   : > { %v552_v34 = vpop.f32.mrf.mxu0 }
 0x129   : > { %v665_v35 = vpop.f32.mrf.mxu1  ;;  %v3342_v41 = vsub.f32 %v816_v25, %v552_v34  ;;  %1808 = vmatpush.msra.mxu3 %v308_v7 }
 0x12a   : > { %v3344_v29 = vsub.f32 %v816_v25, %v665_v35 }
 0x12b   : > { %v995_v11 = vmin.f32 %v993_v38, %v3342_v41  ;;  %2290 = vmatmul.msk.f32.gmra.mxu0 %vm4503_vm0, %v306_v36  ;;  %1809 = vmatpush.msra.mxu3 %v307_v51 }
 0x12c   : > { %4527 = vst [vmem:[#allocation12_spill] sm:$0xff] %v3344_v29  ;;  %v1032_v27 = vmin.f32 %v3290_v4, %v3344_v29  ;;  %2338 = vmatmul.msk.f32.gmra.mxu1 %vm4503_vm0, %v306_v36 }
 0x12d   : > { %1810 = vmatpush.msra.mxu3 %v306_v36  ;;  %v836_v36 = vpop.permute.xlu2 %835 }
 0x12f   : > { %1811 = vmatpush.msra.mxu3 %v3303_v12 }
 0x130   : > { %v555_v49 = vpop.f32.mrf.mxu0 }
 0x131   : > { %v668_v50 = vpop.f32.mrf.mxu1  ;;  %v3363_v55 = vsub.f32 %v821_v45, %v555_v49  ;;  %1812 = vmatpush.msra.mxu3 %v3285_v2 }
 0x132   : > { %v3365_v56 = vsub.f32 %v821_v45, %v668_v50 }
 0x133   : > { %v996_v57 = vmin.f32 %v994_v52, %v3363_v55  ;;  %2291 = vmatmul.msk.f32.gmra.mxu0 %vm4503_vm0, %v307_v51  ;;  %1813 = vmatpush.msra.mxu3 %v3273_v60 }
 0x134   : > { %4528 = vst [vmem:[#allocation13_spill] sm:$0xff] %v3365_v56  ;;  %v1033_v58 = vmin.f32 %v3318_v21, %v3365_v56  ;;  %2339 = vmatmul.msk.f32.gmra.mxu1 %vm4503_vm0, %v307_v51 }
 0x135   : > { %1814 = vmatpush.msra.mxu3 %v3258_v53  ;;  %v841_v53 = vpop.permute.xlu0 %840 }
 0x137   : > { %1815 = vmatpush.msra.mxu3 %v3243_v46 }
 0x138   : > { %v558_v1 = vpop.f32.mrf.mxu0 }
 0x139   : > { %v671_v4 = vpop.f32.mrf.mxu1  ;;  %v3384_v9 = vsub.f32 %v826_v63, %v558_v1  ;;  %1816 = vmatpush.msra.mxu3 %v3228_v39 }
 0x13a   : > { %v3386_v10 = vsub.f32 %v826_v63, %v671_v4 }
 0x13b   : > { %v997_v18 = vmin.f32 %v995_v11, %v3384_v9  ;;  %2292 = vmatmul.msk.f32.gmra.mxu0 %vm4503_vm0, %v308_v7  ;;  %1817 = vmatpush.msra.mxu3 %v3211_v32  ;;  %v846_v32 = vpop.permute.xlu1 %845 }
 0x13c   : > { %4529 = vst [vmem:[#allocation14_spill] sm:$0xff] %v3386_v10  ;;  %v1034_v21 = vmin.f32 %v1032_v27, %v3386_v10  ;;  %2340 = vmatmul.msk.f32.gmra.mxu1 %vm4503_vm0, %v308_v7 }
 0x13d   : > { %1818 = vmatpush.msra.mxu3 %v3182_v22  ;;  %v856_v7 = vpop.permute.xlu0 %855 }
 0x13f   : > { %1819 = vmatpush.msra.mxu3 %v3155_v13 }
 0x140   : > { %v561_v25 = vpop.f32.mrf.mxu0 }
 0x141   : > { %v674_v26 = vpop.f32.mrf.mxu1  ;;  %v3393_v34 = vsub.f32 %v831_v6, %v561_v25  ;;  %1820 = vmatpush.msra.mxu3 %v3138_v8  ;;  %v851_v8 = vpop.permute.xlu2 %850 }
 0x142   : > { %v3395_v35 = vsub.f32 %v831_v6, %v674_v26 }
 0x143   : > { %v998_v38 = vmin.f32 %v996_v57, %v3393_v34  ;;  %2293 = vmatmul.msk.f32.gmra.mxu0 %vm4503_vm0, %v309_v0 }
 0x144   : > { %4530 = vst [vmem:[#allocation15_spill] sm:$0xff] %v3395_v35  ;;  %v1035_v30 = vmin.f32 %v1033_v58, %v3395_v35  ;;  %2341 = vmatmul.msk.f32.gmra.mxu1 %vm4503_vm0, %v309_v0 }
 0x148   : > { %v564_v12 = vpop.f32.mrf.mxu0 }
 0x149   : > { %v677_v11 = vpop.f32.mrf.mxu1  ;;  %v3405_v27 = vsub.f32 %v836_v36, %v564_v12 }
 0x14a   : > { %v3407_v2 = vsub.f32 %v836_v36, %v677_v11 }
 0x14b   : > { %v999_v43 = vmin.f32 %v997_v18, %v3405_v27  ;;  %2294 = vmatmul.msk.f32.gmra.mxu0 %vm4503_vm0, %v310_v62 }
 0x14c   : > { %4531 = vst [vmem:[#allocation16_spill] sm:$0xff] %v3407_v2  ;;  %v1036_v45 = vmin.f32 %v1034_v21, %v3407_v2  ;;  %2342 = vmatmul.msk.f32.gmra.mxu1 %vm4503_vm0, %v310_v62 }
 0x150   : > { %v567_v46 = vpop.f32.mrf.mxu0 }
 0x151   : > { %v680_v60 = vpop.f32.mrf.mxu1  ;;  %v3417_v48 = vsub.f32 %v841_v53, %v567_v46  ;;  %v866_v46 = vpop.permute.xlu2 %865 }
 0x152   : > { %v3419_v39 = vsub.f32 %v841_v53, %v680_v60 }
 0x153   : > { %v1000_v49 = vmin.f32 %v998_v38, %v3417_v48  ;;  %2295 = vmatmul.msk.f32.gmra.mxu0 %vm4503_vm0, %v311_v59 }
 0x154   : > { %4532 = vst [vmem:[#allocation17_spill] sm:$0xff] %v3419_v39  ;;  %v1037_v50 = vmin.f32 %v1035_v30, %v3419_v39  ;;  %2343 = vmatmul.msk.f32.gmra.mxu1 %vm4503_vm0, %v311_v59  ;;  %v861_v30 = vpop.permute.xlu1 %860 }
 0x158   : > { %v570_v22 = vpop.f32.mrf.mxu0 }
 0x159   : > { %v683_v51 = vpop.f32.mrf.mxu1  ;;  %v3426_v52 = vsub.f32 %v846_v32, %v570_v22 }
 0x15a   : > { %v3428_v13 = vsub.f32 %v846_v32, %v683_v51 }
 0x15b   : > { %v1001_v57 = vmin.f32 %v999_v43, %v3426_v52 }
 0x15c   : > { %4533 = vst [vmem:[#allocation18_spill] sm:$0xff] %v3428_v13  ;;  %v1038_v58 = vmin.f32 %v1036_v45, %v3428_v13 }
 0x160   : > { %v573_v62 = vpop.f32.mrf.mxu0 }
 0x161   : > { %v686_v63 = vpop.f32.mrf.mxu1  ;;  %v3432_v0 = vsub.f32 %v851_v8, %v573_v62 }
 0x162   : > { %v3434_v1 = vsub.f32 %v851_v8, %v686_v63 }
 0x163   : > { %v1002_v59 = vmin.f32 %v1000_v49, %v3432_v0 }
 0x164   : > { %4534 = vst [vmem:[#allocation19_spill] sm:$0xff] %v3434_v1  ;;  %v1039_v4 = vmin.f32 %v1037_v50, %v3434_v1 }
 0x168   : > { %v576_v18 = vpop.f32.mrf.mxu0 }
 0x169   : > { %v689_v21 = vpop.f32.mrf.mxu1  ;;  %v3438_v6 = vsub.f32 %v856_v7, %v576_v18 }
 0x16a   : > { %v3440_v25 = vsub.f32 %v856_v7, %v689_v21  ;;  %v876_v7 = vpop.permute.xlu1 %875 }
 0x16b   : > { %v1003_v26 = vmin.f32 %v1001_v57, %v3438_v6  ;;  %v871_v57 = vpop.permute.xlu0 %870 }
 0x16c   : > { %4535 = vst [vmem:[#allocation20_spill] sm:$0xff] %v3440_v25  ;;  %v1040_v38 = vmin.f32 %v1038_v58, %v3440_v25 }
 0x170   : > { %v579_v36 = vpop.f32.mrf.mxu0 }
 0x171   : > { %v692_v12 = vpop.f32.mrf.mxu1  ;;  %v3444_v11 = vsub.f32 %v861_v30, %v579_v36 }
 0x172   : > { %v3446_v43 = vsub.f32 %v861_v30, %v692_v12 }
 0x173   : > { %v1004_v45 = vmin.f32 %v1002_v59, %v3444_v11  ;;  %v886_v25 = vpop.permute.xlu0 %885 }
 0x174   : > { %4536 = vst [vmem:[#allocation21_spill] sm:$0xff] %v3446_v43  ;;  %v1041_v53 = vmin.f32 %v1039_v4, %v3446_v43 }
 0x178   : > { %v582_v60 = vpop.f32.mrf.mxu0 }
 0x179   : > { %v695_v49 = vpop.f32.mrf.mxu1  ;;  %v3450_v50 = vsub.f32 %v866_v46, %v582_v60 }
 0x17a   : > { %v3452_v32 = vsub.f32 %v866_v46, %v695_v49 }
 0x17b   : > { %v1005_v22 = vmin.f32 %v1003_v26, %v3450_v50  ;;  %v901_v13 = vpop.permute.xlu0 %900 }
 0x17c   : > { %4537 = vst [vmem:[#allocation22_spill] sm:$0xff] %v3452_v32  ;;  %v1042_v51 = vmin.f32 %v1040_v38, %v3452_v32  ;;  %v881_v32 = vpop.permute.xlu2 %880 }
 0x180   : > { %v585_v58 = vpop.f32.mrf.mxu0 }
 0x181   : > { %v698_v8 = vpop.f32.mrf.mxu1  ;;  %v3456_v62 = vsub.f32 %v871_v57, %v585_v58 }
 0x182   : > { %v3458_v63 = vsub.f32 %v871_v57, %v698_v8 }
 0x183   : > { %v1006_v59 = vmin.f32 %v1004_v45, %v3456_v62 }
 0x184   : > { %4538 = vst [vmem:[#allocation23_spill] sm:$0xff] %v3458_v63  ;;  %v1043_v4 = vmin.f32 %v1041_v53, %v3458_v63 }
 0x188   : > { %v588_v18 = vpop.f32.mrf.mxu0 }
 0x189   : > { %v701_v21 = vpop.f32.mrf.mxu1  ;;  %v3462_v30 = vsub.f32 %v876_v7, %v588_v18 }
 0x18a   : > { %v3464_v36 = vsub.f32 %v876_v7, %v701_v21  ;;  %v891_v7 = vpop.permute.xlu1 %890 }
 0x18b   : > { %v1007_v26 = vmin.f32 %v1005_v22, %v3462_v30  ;;  %v896_v22 = vpop.permute.xlu2 %895 }
 0x18c   : > { %4539 = vst [vmem:[#allocation24_spill] sm:$0xff] %v3464_v36  ;;  %v1044_v38 = vmin.f32 %v1042_v51, %v3464_v36 }
 0x190   : > { %v591_v12 = vpop.f32.mrf.mxu0 }
 0x191   : > { %v704_v46 = vpop.f32.mrf.mxu1  ;;  %v3468_v36 = vsub.f32 %v881_v32, %v591_v12 }
 0x192   : > { %v906_v51 = vpop.permute.xlu1 %905  ;;  %v3470_v39 = vsub.f32 %v881_v32, %v704_v46 }
 0x193   : > { %v1008_v54 = vmin.f32 %v1006_v59, %v3468_v36 }
 0x194   : > { %4540 = vst [vmem:[#allocation25_spill] sm:$0xff] %v3470_v39  ;;  %v1045_v12 = vmin.f32 %v1043_v4, %v3470_v39 }
 0x198   : > { %v594_v60 = vpop.f32.mrf.mxu0 }
 0x199   : > { %v707_v49 = vpop.f32.mrf.mxu1  ;;  %v3472_v2 = vsub.f32 %v886_v25, %v594_v60 }
 0x19a   : > { %v3474_v35 = vsub.f32 %v886_v25, %v707_v49  ;;  %v911_v25 = vpop.permute.xlu2 %910 }
 0x19b   : > { %v1009_v60 = vmin.f32 %v1007_v26, %v3472_v2  ;;  %v921_v26 = vpop.permute.xlu1 %920 }
 0x19c   : > { %4541 = vst [vmem:[#allocation26_spill] sm:$0xff] %v3474_v35  ;;  %v1046_v49 = vmin.f32 %v1044_v38, %v3474_v35 }
 0x1a0   : > { %v597_v57 = vpop.f32.mrf.mxu0 }
 0x1a1   : > { %v710_v58 = vpop.f32.mrf.mxu1  ;;  %v3476_v29 = vsub.f32 %v891_v7, %v597_v57 }
 0x1a2   : > { %v3478_v16 = vsub.f32 %v891_v7, %v710_v58 }
 0x1a4   : > { %4542 = vst [vmem:[#allocation27_spill] sm:$0xff] %v3478_v16 }
 0x1a8   : > { %v600_v45 = vpop.f32.mrf.mxu0 }
 0x1a9   : > { %v713_v8 = vpop.f32.mrf.mxu1  ;;  %v3480_v3 = vsub.f32 %v896_v22, %v600_v45  ;;  %v1010_v45 = vmin.f32 %v1008_v54, %v3476_v29 }
 0x1aa   : > { %v3482_v61 = vsub.f32 %v896_v22, %v713_v8  ;;  %v1047_v8 = vmin.f32 %v1045_v12, %v3478_v16 }
 0x1ac   : > { %4543 = vst [vmem:[#allocation28_spill] sm:$0xff] %v3482_v61 }
 0x1b0   : > { %v603_v53 = vpop.f32.mrf.mxu0 }
 0x1b1   : > { %v716_v63 = vpop.f32.mrf.mxu1  ;;  %v3486_v32 = vsub.f32 %v901_v13, %v603_v53  ;;  %v916_v53 = vpop.permute.xlu0 %915 }
 0x1b2   : > { %v3488_v46 = vsub.f32 %v901_v13, %v716_v63  ;;  %v1011_v13 = vmin.f32 %v1009_v60, %v3480_v3  ;;  %v1048_v63 = vmin.f32 %v1046_v49, %v3482_v61 }
 0x1b3   : > { %v1012_v38 = vmin.f32 %v1010_v45, %v3486_v32 }
 0x1b4   : > { %4544 = vst [vmem:[#allocation29_spill] sm:$0xff] %v3488_v46 }
 0x1b8   : > { %v606_v43 = vpop.f32.mrf.mxu0 }
 0x1b9   : > { %v719_v18 = vpop.f32.mrf.mxu1  ;;  %v3492_v57 = vsub.f32 %v906_v51, %v606_v43  ;;  %v1049_v43 = vmin.f32 %v1047_v8, %v3488_v46 }
 0x1ba   : > { %v3494_v58 = vsub.f32 %v906_v51, %v719_v18 }
 0x1bb   : > { %v1013_v54 = vmin.f32 %v1011_v13, %v3492_v57 }
 0x1bc   : > { %4545 = vst [vmem:[#allocation30_spill] sm:$0xff] %v3494_v58 }
 0x1c0   : > { %v609_v21 = vpop.f32.mrf.mxu0 }
 0x1c1   : > { %v722_v1 = vpop.f32.mrf.mxu1  ;;  %v3498_v59 = vsub.f32 %v911_v25, %v609_v21  ;;  %v1050_v21 = vmin.f32 %v1048_v63, %v3494_v58  ;;  %v4485_v58 = vlaneseq }
 0x1c2   : > { %v3500_v4 = vsub.f32 %v911_v25, %v722_v1 }
 0x1c3   : > { %4546 = vst [vmem:[#allocation31_spill] sm:$0xff] %v3498_v59  ;;  %v1014_v51 = vmin.f32 %v1012_v38, %v3498_v59 }
 0x1c4   : > { %4547 = vst [vmem:[#allocation32_spill] sm:$0xff] %v3500_v4  ;;  %v1051_v12 = vmin.f32 %v1049_v43, %v3500_v4 }
 0x1c8   : > { %v612_v10 = vpop.f32.mrf.mxu0 }
 0x1c9   : > { %v725_v56 = vpop.f32.mrf.mxu1  ;;  %v3506_v18 = vsub.f32 %v916_v53, %v612_v10 }
 0x1ca   : > { %v3508_v7 = vsub.f32 %v916_v53, %v725_v56 }
 0x1cb   : > { %4548 = vst [vmem:[#allocation33_spill] sm:$0xff] %v3506_v18  ;;  %v1015_v49 = vmin.f32 %v1013_v54, %v3506_v18 }
 0x1cc   : > { %4549 = vst [vmem:[#allocation34_spill] sm:$0xff] %v3508_v7  ;;  %v1052_v10 = vmin.f32 %v1050_v21, %v3508_v7 }
 0x1d0   : > { %v615_v1 = vpop.f32.mrf.mxu0 }
 0x1d1   : > { %v728_v22 = vpop.f32.mrf.mxu1  ;;  %v3514_v25 = vsub.f32 %v921_v26, %v615_v1  ;;  %v3523_v1 = vshrl.u32 %v4485_v58, 7 }
 0x1d2   : > { %v3516_v60 = vsub.f32 %v921_v26, %v728_v22 }
 0x1d3   : > { %4550 = vst [vmem:[#allocation35_spill] sm:$0xff] %v3514_v25  ;;  %v1016_v56 = vmin.f32 %v1014_v51, %v3514_v25  ;;  %v3526_v21 = vadd.s32 8, %v3523_v1  ;;  %v3603_v58 = vadd.s32 128, %v3523_v1  ;;  %v3609_v7 = vadd.s32 144, %v3523_v1 }
 0x1d4   : > { %4551 = vst [vmem:[#allocation36_spill] sm:$0xff] %v3516_v60  ;;  %v1053_v45 = vmin.f32 %v1051_v12, %v3516_v60  ;;  %v3531_v12 = vadd.s32 16, %v3523_v1  ;;  %v3606_v60 = vadd.s32 136, %v3523_v1  ;;  %v3612_v4 = vadd.s32 152, %v3523_v1 }
 0x1d5   : > { %v1017_v8 = vmin.f32 %v1015_v49, %v1016_v56  ;;  %v3534_v49 = vadd.s32 24, %v3523_v1  ;;  %v3540_v56 = vadd.s32 40, %v3523_v1  ;;  %v3615_v61 = vadd.s32 160, %v3523_v1 }
 0x1d6   : > { %v1054_v53 = vmin.f32 %v1052_v10, %v1053_v45  ;;  %v3537_v10 = vadd.s32 32, %v3523_v1  ;;  %v3546_v45 = vadd.s32 56, %v3523_v1  ;;  %v3618_v16 = vadd.s32 168, %v3523_v1 }
 0x1d7   : > { %v1018_v13 = vrot.slane %v1017_v8, 4  ;;  %v3621_v35 = vadd.s32 176, %v3523_v1  ;;  %v3624_v39 = vadd.s32 184, %v3523_v1  ;;  %v3627_v25 = vadd.s32 192, %v3523_v1 }
 0x1d8   : > { %v1055_v63 = vrot.slane %v1054_v53, 4  ;;  %4552 = vst [vmem:[#allocation37_spill] sm:$0xff] %v3546_v45  ;;  %v3630_v59 = vadd.s32 200, %v3523_v1 }
 0x1d9   : > { %v1019_v38 = vmin.f32 %v1017_v8, %v1018_v13  ;;  %v3549_v8 = vadd.s32 64, %v3523_v1  ;;  %v3555_v13 = vadd.s32 80, %v3523_v1  ;;  %4558 = vst [vmem:[#allocation43_spill] sm:$0xff] %v3627_v25 }
 0x1da   : > { %v1056_v43 = vmin.f32 %v1054_v53, %v1055_v63  ;;  %v3552_v53 = vadd.s32 72, %v3523_v1  ;;  %v3558_v63 = vadd.s32 88, %v3523_v1  ;;  %4559 = vst [vmem:[#allocation44_spill] sm:$0xff] %v3630_v59 }
 0x1db   : > { %v1020_v46 = vrot.slane %v1019_v38, 2  ;;  %4553 = vst [vmem:[#allocation38_spill] sm:$0xff] %v3555_v13 }
 0x1dc   : > { %v1057_v54 = vrot.slane %v1056_v43, 2  ;;  %4554 = vst [vmem:[#allocation39_spill] sm:$0xff] %v3558_v63 }
 0x1dd   : > { %v1021_v26 = vmin.f32 %v1019_v38, %v1020_v46  ;;  %v3543_v46 = vadd.s32 48, %v3523_v1  ;;  %v3561_v38 = vadd.s32 96, %v3523_v1 }
 0x1df   : > { %v1022_v22 = vrot.slane %v1021_v26, 1  ;;  %4555 = vst [vmem:[#allocation40_spill] sm:$0xff] %v3561_v38 }
 0x1e1   : > { %v3528_v51 = vmin.f32 %v1021_v26, %v1022_v22  ;;  %v1058_v26 = vmin.f32 %v1056_v43, %v1057_v54  ;;  %v3588_v43 = vadd.s32 104, %v3523_v1  ;;  %v3597_v22 = vadd.s32 112, %v3523_v1 }
 0x1e2   : > { %v3600_v54 = vadd.s32 120, %v3523_v1 }
 0x1e3   : > { %vm1110_vm1 = vcmp.eq.f32.partialorder %v3325_v17, %v3528_v51  ;;  %vm1112_vm2 = vcmp.eq.f32.partialorder %v3356_v44, %v3528_v51  ;;  %vm1114_vm3 = vcmp.eq.f32.partialorder %v3342_v41, %v3528_v51  ;;  %vm1116_vm4 = vcmp.eq.f32.partialorder %v3363_v55, %v3528_v51  ;;  %4556 = vst [vmem:[#allocation41_spill] sm:$0xff] %v3588_v43 }
 0x1e4   : > { %vm1118_vm5 = vcmp.eq.f32.partialorder %v3384_v9, %v3528_v51  ;;  %vm1120_vm6 = vcmp.eq.f32.partialorder %v3393_v34, %v3528_v51  ;;  %vm1122_vm7 = vcmp.eq.f32.partialorder %v3405_v27, %v3528_v51  ;;  %vm1124_vm8 = vcmp.eq.f32.partialorder %v3417_v48, %v3528_v51  ;;  %4557 = vst [vmem:[#allocation42_spill] sm:$0xff] %v3597_v22 }
 0x1e5   : > { %v1059_v18 = vrot.slane %v1058_v26, 1  ;;  %vm1094_vm0 = vcmp.eq.f32.partialorder %v3307_v14, %v3528_v51  ;;  %vm1096_vm15 = vcmp.eq.f32.partialorder %v3334_v31, %v3528_v51  ;;  %vm1098_vm14 = vcmp.eq.f32.partialorder %v3298_v5, %v3528_v51 }
 0x1e6   : > { %vm1100_vm13 = vcmp.eq.f32.partialorder %v3329_v24, %v3528_v51  ;;  %vm1102_vm12 = vcmp.eq.f32.partialorder %v3309_v15, %v3528_v51  ;;  %vm1104_vm11 = vcmp.eq.f32.partialorder %v3339_v37, %v3528_v51  ;;  %vm1106_vm10 = vcmp.eq.f32.partialorder %v3315_v20, %v3528_v51 }
 0x1e7   : > { %v3647_v14 = vadd.s32 208, %v3523_v1  ;;  %v3650_v31 = vadd.s32 216, %v3523_v1  ;;  %v3653_v5 = vadd.s32 224, %v3523_v1  ;;  %vm1108_vm9 = vcmp.eq.f32.partialorder %v3348_v42, %v3528_v51 }
 0x1e8   : > { %v1158_v15 = vsel %vm1094_vm0, %v3523_v1, 256  ;;  %v1160_v24 = vsel %vm1096_vm15, %v3526_v21, 256  ;;  %v1162_v37 = vsel %vm1098_vm14, %v3531_v12, 256  ;;  %v3660_v59 = vmin.f32 %v1058_v26, %v1059_v18 }
 0x1e9   : > { %4560 = vst [vmem:[#allocation45_spill] sm:$0xff] %v3647_v14  ;;  %v1164_v20 = vsel %vm1100_vm13, %v3534_v49, 256  ;;  %v1166_v14 = vsel %vm1102_vm12, %v3537_v10, 256  ;;  %v1170_v25 = vsel %vm1106_vm10, %v3543_v46, 256  ;;  %v1174_v42 = vsel %vm1110_vm1, %v3549_v8, 256 }
 0x1ea   : > { %4561 = vst [vmem:[#allocation46_spill] sm:$0xff] %v3650_v31  ;;  %v1168_v31 = vsel %vm1104_vm11, %v3540_v56, 256  ;;  %v1176_v18 = vsel %vm1112_vm2, %v3552_v53, 256  ;;  %v1178_v26 = vsel %vm1114_vm3, %v3555_v13, 256  ;;  %v1182_v17 = vsel %vm1118_vm5, %v3561_v38, 256  ;;  %v4567_v38 = vld [vmem:[#allocation12_spill] sm:$0xff] }
 0x1eb   : > { %4562 = vst [vmem:[#allocation47_spill] sm:$0xff] %v3653_v5  ;;  %v1172_v5 = vsel %vm1108_vm9, %v3546_v45, 256  ;;  %v1180_v45 = vsel %vm1116_vm4, %v3558_v63, 256  ;;  %v1184_v44 = vsel %vm1120_vm6, %v3588_v43, 256  ;;  %v1186_v41 = vsel %vm1122_vm7, %v3597_v22, 256  ;;  %v4563_v22 = vld [vmem:[#allocation8_spill] sm:$0xff] }
 0x1ec   : > { %vm1222_vm0 = vcmp.lt.s32.totalorder %v1158_v15, %v1162_v37  ;;  %vm1224_vm1 = vcmp.lt.s32.totalorder %v1160_v24, %v1164_v20  ;;  %vm1095_vm2 = vcmp.eq.f32.partialorder %v3175_v19, %v3660_v59  ;;  %vm1097_vm3 = vcmp.eq.f32.partialorder %v3202_v28, %v3660_v59  ;;  %v4571_v13 = vld [vmem:[#allocation16_spill] sm:$0xff] }
 0x1ed   : > { %v1223_v55 = vsel %vm1222_vm0, %v1158_v15, %v1162_v37  ;;  %v1225_v9 = vsel %vm1224_vm1, %v1160_v24, %v1164_v20  ;;  %vm1099_vm4 = vcmp.eq.f32.partialorder %v3185_v23, %v3660_v59  ;;  %vm1101_vm5 = vcmp.eq.f32.partialorder %v3214_v33, %v3660_v59  ;;  %v4564_v15 = vld [vmem:[#allocation9_spill] sm:$0xff]  ;;  %v4565_v24 = vld [vmem:[#allocation10_spill] sm:$0xff]  ;;  %v4566_v37 = vld [vmem:[#allocation11_spill] sm:$0xff] }
 0x1ee   : > { %vm1226_vm6 = vcmp.lt.s32.totalorder %v1223_v55, %v1166_v14  ;;  %vm1228_vm9 = vcmp.lt.s32.totalorder %v1225_v9, %v1168_v31  ;;  %vm4580_vm12 = vcmp.eq.f32.partialorder %v3426_v52, %v3528_v51  ;;  %vm4584_vm15 = vcmp.eq.f32.partialorder %v3450_v50, %v3528_v51 }
 0x1ef   : > { %v1227_v34 = vsel %vm1226_vm6, %v1223_v55, %v1166_v14  ;;  %v1229_v27 = vsel %vm1228_vm9, %v1225_v9, %v1168_v31  ;;  %v4568_v14 = vld [vmem:[#allocation13_spill] sm:$0xff]  ;;  %v4575_v55 = vld [vmem:[#allocation20_spill] sm:$0xff]  ;;  %vm4586_vm7 = vcmp.eq.f32.partialorder %v3462_v30, %v3528_v51 }
 0x1f0   : > { %vm1230_vm13 = vcmp.lt.s32.totalorder %v1227_v34, %v1170_v25  ;;  %vm1232_vm14 = vcmp.lt.s32.totalorder %v1229_v27, %v1172_v5  ;;  %v1202_v50 = vsel %vm4586_vm7, %v3621_v35, 256 }
 0x1f1   : > { %v1231_v20 = vsel %vm1230_vm13, %v1227_v34, %v1170_v25  ;;  %v1233_v43 = vsel %vm1232_vm14, %v1229_v27, %v1172_v5  ;;  %v4572_v25 = vld [vmem:[#allocation17_spill] sm:$0xff]  ;;  %v4573_v5 = vld [vmem:[#allocation18_spill] sm:$0xff]  ;;  %v4574_v34 = vld [vmem:[#allocation19_spill] sm:$0xff] }
 0x1f2   : > { %vm1234_vm9 = vcmp.lt.s32.totalorder %v1231_v20, %v1174_v42  ;;  %vm1236_vm11 = vcmp.lt.s32.totalorder %v1233_v43, %v1176_v18 }
 0x1f3   : > { %v1235_v9 = vsel %vm1234_vm9, %v1231_v20, %v1174_v42  ;;  %v1237_v63 = vsel %vm1236_vm11, %v1233_v43, %v1176_v18  ;;  %v4577_v42 = vld [vmem:[#allocation22_spill] sm:$0xff]  ;;  %v4579_v20 = vld [vmem:[#allocation24_spill] sm:$0xff]  ;;  %v3749_v43 = vadd.s32 240, %v3523_v1  ;;  %v1190_v18 = vsel %vm4580_vm12, %v3603_v58, 256 }
 0x1f4   : > { %vm1238_vm1 = vcmp.lt.s32.totalorder %v1235_v9, %v1178_v26  ;;  %vm1240_vm0 = vcmp.lt.s32.totalorder %v1237_v63, %v1180_v45  ;;  %vm4582_vm11 = vcmp.eq.f32.partialorder %v3438_v6, %v3528_v51  ;;  %vm4583_vm12 = vcmp.eq.f32.partialorder %v3444_v11, %v3528_v51 }
 0x1f5   : > { %v1239_v27 = vsel %vm1238_vm1, %v1235_v9, %v1178_v26  ;;  %v1241_v31 = vsel %vm1240_vm0, %v1237_v63, %v1180_v45  ;;  %v1188_v26 = vsel %vm1124_vm8, %v3600_v54, 256  ;;  %v3746_v9 = vadd.s32 232, %v3523_v1 }
 0x1f6   : > { %vm1242_vm13 = vcmp.lt.s32.totalorder %v1239_v27, %v1182_v17  ;;  %vm1244_vm10 = vcmp.lt.s32.totalorder %v1241_v31, %v1184_v44  ;;  %vm4581_vm8 = vcmp.eq.f32.partialorder %v3432_v0, %v3528_v51  ;;  %v1194_v52 = vsel %vm4582_vm11, %v3609_v7, 256 }
 0x1f7   : > { %v1243_v45 = vsel %vm1242_vm13, %v1239_v27, %v1182_v17  ;;  %v1245_v63 = vsel %vm1244_vm10, %v1241_v31, %v1184_v44  ;;  %v1192_v48 = vsel %vm4581_vm8, %v3606_v60, 256  ;;  %v3760_v31 = vadd.s32 248, %v3523_v1 }
 0x1f8   : > { %vm1246_vm1 = vcmp.lt.s32.totalorder %v1243_v45, %v1186_v41  ;;  %vm1248_vm14 = vcmp.lt.s32.totalorder %v1245_v63, %v1188_v26  ;;  %vm1140_vm10 = vcmp.eq.f32.partialorder %v3468_v36, %v3528_v51  ;;  %v1196_v0 = vsel %vm4583_vm12, %v3612_v4, 256 }
 0x1f9   : > { %v1247_v17 = vsel %vm1246_vm1, %v1243_v45, %v1186_v41  ;;  %v1249_v44 = vsel %vm1248_vm14, %v1245_v63, %v1188_v26  ;;  %vm1142_vm14 = vcmp.eq.f32.partialorder %v3472_v2, %v3528_v51  ;;  %vm1144_vm1 = vcmp.eq.f32.partialorder %v3476_v29, %v3528_v51 }
 0x1fa   : > { %vm1250_vm13 = vcmp.lt.s32.totalorder %v1247_v17, %v1190_v18  ;;  %vm1252_vm0 = vcmp.lt.s32.totalorder %v1249_v44, %v1192_v48  ;;  %v1198_v6 = vsel %vm4584_vm15, %v3615_v61, 256  ;;  %vm4585_vm11 = vcmp.eq.f32.partialorder %v3456_v62, %v3528_v51 }
 0x1fb   : > { %v1251_v41 = vsel %vm1250_vm13, %v1247_v17, %v1190_v18  ;;  %v1253_v27 = vsel %vm1252_vm0, %v1249_v44, %v1192_v48  ;;  %v1200_v11 = vsel %vm4585_vm11, %v3618_v16, 256  ;;  %vm1146_vm0 = vcmp.eq.f32.partialorder %v3480_v3, %v3528_v51  ;;  %v4587_v48 = vld [vmem:[#allocation31_spill] sm:$0xff]  ;;  %v4589_v44 = vld [vmem:[#allocation44_spill] sm:$0xff] }
 0x1fc   : > { %vm1254_vm8 = vcmp.lt.s32.totalorder %v1251_v41, %v1194_v52  ;;  %vm1256_vm9 = vcmp.lt.s32.totalorder %v1253_v27, %v1196_v0  ;;  %vm1148_vm13 = vcmp.eq.f32.partialorder %v3486_v32, %v3528_v51  ;;  %v1204_v62 = vsel %vm1140_vm10, %v3624_v39, 256  ;;  %v4588_v17 = vld [vmem:[#allocation43_spill] sm:$0xff] }
 0x1fd   : > { %v1255_v18 = vsel %vm1254_vm8, %v1251_v41, %v1194_v52  ;;  %v1257_v26 = vsel %vm1256_vm9, %v1253_v27, %v1196_v0  ;;  %vm1150_vm15 = vcmp.eq.f32.partialorder %v3492_v57, %v3528_v51  ;;  %vm1152_vm9 = vcmp.eq.f32.partialorder %v4587_v48, %v3528_v51  ;;  %v4590_v41 = vld [vmem:[#allocation33_spill] sm:$0xff]  ;;  %v4591_v27 = vld [vmem:[#allocation35_spill] sm:$0xff] }
 0x1fe   : > { %vm1258_vm12 = vcmp.lt.s32.totalorder %v1255_v18, %v1198_v6  ;;  %vm1260_vm6 = vcmp.lt.s32.totalorder %v1257_v26, %v1200_v11  ;;  %v1206_v30 = vsel %vm1142_vm14, %v4588_v17, 256  ;;  %v1208_v36 = vsel %vm1144_vm1, %v4589_v44, 256 }
 0x1ff   : > { %v1259_v45 = vsel %vm1258_vm12, %v1255_v18, %v1198_v6  ;;  %v1261_v63 = vsel %vm1260_vm6, %v1257_v26, %v1200_v11  ;;  %vm1154_vm7 = vcmp.eq.f32.partialorder %v4590_v41, %v3528_v51  ;;  %vm1156_vm6 = vcmp.eq.f32.partialorder %v4591_v27, %v3528_v51  ;;  %v4592_v6 = vld [vmem:[#allocation45_spill] sm:$0xff]  ;;  %v4593_v11 = vld [vmem:[#allocation46_spill] sm:$0xff] }
 0x200   : > { %vm1262_vm8 = vcmp.lt.s32.totalorder %v1259_v45, %v1202_v50  ;;  %vm1264_vm11 = vcmp.lt.s32.totalorder %v1261_v63, %v1204_v62  ;;  %v1210_v2 = vsel %vm1146_vm0, %v4592_v6, 256  ;;  %v1212_v29 = vsel %vm1148_vm13, %v4593_v11, 256 }
 0x201   : > { %v1263_v52 = vsel %vm1262_vm8, %v1259_v45, %v1202_v50  ;;  %v1265_v0 = vsel %vm1264_vm11, %v1261_v63, %v1204_v62  ;;  %v4594_v50 = vld [vmem:[#allocation47_spill] sm:$0xff]  ;;  %v1216_v3 = vsel %vm1152_vm9, %v3746_v9, 256  ;;  %v1218_v41 = vsel %vm1154_vm7, %v3749_v43, 256 }
 0x202   : > { %vm1266_vm10 = vcmp.lt.s32.totalorder %v1263_v52, %v1206_v30  ;;  %vm1268_vm12 = vcmp.lt.s32.totalorder %v1265_v0, %v1208_v36  ;;  %v1214_v62 = vsel %vm1150_vm15, %v4594_v50, 256  ;;  %v1220_v32 = vsel %vm1156_vm6, %v3760_v31, 256 }
 0x203   : > { %v1267_v18 = vsel %vm1266_vm10, %v1263_v52, %v1206_v30  ;;  %v1269_v26 = vsel %vm1268_vm12, %v1265_v0, %v1208_v36  ;;  %v1159_v57 = vsel %vm1095_vm2, %v3523_v1, 256  ;;  %v1161_v51 = vsel %vm1097_vm3, %v3526_v21, 256 }
 0x204   : > { %vm1270_vm14 = vcmp.lt.s32.totalorder %v1267_v18, %v1210_v2  ;;  %vm1272_vm1 = vcmp.lt.s32.totalorder %v1269_v26, %v1212_v29  ;;  %v1163_v48 = vsel %vm1099_vm4, %v3531_v12, 256  ;;  %v1165_v52 = vsel %vm1101_vm5, %v3534_v49, 256 }
 0x205   : > { %v1271_v45 = vsel %vm1270_vm14, %v1267_v18, %v1210_v2  ;;  %v1273_v63 = vsel %vm1272_vm1, %v1269_v26, %v1212_v29  ;;  %vm4595_vm3 = vcmp.eq.f32.partialorder %v3230_v40, %v3660_v59  ;;  %vm1293_vm8 = vcmp.lt.s32.totalorder %v1159_v57, %v1163_v48  ;;  %v4598_v40 = vld [vmem:[#allocation37_spill] sm:$0xff] }
 0x206   : > { %vm1274_vm0 = vcmp.lt.s32.totalorder %v1271_v45, %v1214_v62  ;;  %vm1276_vm13 = vcmp.lt.s32.totalorder %v1273_v63, %v1216_v3  ;;  %v1167_v28 = vsel %vm4595_vm3, %v3537_v10, 256  ;;  %vm1295_vm11 = vcmp.lt.s32.totalorder %v1161_v51, %v1165_v52 }
 0x207   : > { %v1275_v30 = vsel %vm1274_vm0, %v1271_v45, %v1214_v62  ;;  %v1277_v36 = vsel %vm1276_vm13, %v1273_v63, %v1216_v3  ;;  %vm4596_vm4 = vcmp.eq.f32.partialorder %v3245_v47, %v3660_v59  ;;  %v1294_v29 = vsel %vm1293_vm8, %v1159_v57, %v1163_v48  ;;  %v4606_v57 = vld [vmem:[#allocation40_spill] sm:$0xff] }
 0x208   : > { %vm1278_vm15 = vcmp.lt.s32.totalorder %v1275_v30, %v1218_v41  ;;  %vm1280_vm9 = vcmp.lt.s32.totalorder %v1277_v36, %v1220_v32  ;;  %v1169_v23 = vsel %vm4596_vm4, %v3540_v56, 256  ;;  %v1296_v33 = vsel %vm1295_vm11, %v1161_v51, %v1165_v52  ;;  %v4607_v51 = vld [vmem:[#allocation14_spill] sm:$0xff] }
 0x209   : > { %v1279_v0 = vsel %vm1278_vm15, %v1275_v30, %v1218_v41  ;;  %v1281_v19 = vsel %vm1280_vm9, %v1277_v36, %v1220_v32  ;;  %vm4597_vm5 = vcmp.eq.f32.partialorder %v4563_v22, %v3660_v59  ;;  %vm1297_vm7 = vcmp.lt.s32.totalorder %v1294_v29, %v1167_v28  ;;  %v4604_v36 = vld [vmem:[#allocation39_spill] sm:$0xff] }
 0x20a   : > { %vm1282_vm2 = vcmp.lt.s32.totalorder %v1279_v0, %v1281_v19  ;;  %v1171_v18 = vsel %vm4597_vm5, %v3543_v46, 256  ;;  %vm1299_vm6 = vcmp.lt.s32.totalorder %v1296_v33, %v1169_v23  ;;  %vm4599_vm12 = vcmp.eq.f32.partialorder %v4564_v15, %v3660_v59  ;;  %v4602_v15 = vld [vmem:[#allocation38_spill] sm:$0xff] }
 0x20b   : > { %v1283_v27 = vsel %vm1282_vm2, %v1279_v0, %v1281_v19  ;;  %v1173_v26 = vsel %vm4599_vm12, %v4598_v40, 256  ;;  %v1298_v62 = vsel %vm1297_vm7, %v1294_v29, %v1167_v28  ;;  %v1300_v3 = vsel %vm1299_vm6, %v1296_v33, %v1169_v23  ;;  %v4609_v19 = vld [vmem:[#allocation25_spill] sm:$0xff]  ;;  %v4614_v23 = vld [vmem:[#allocation27_spill] sm:$0xff]  ;;  %v4615_v29 = vld [vmem:[#allocation42_spill] sm:$0xff] }
 0x20c   : > { %v1284_v2 = vrot.slane %v1283_v27, 4  ;;  %vm4600_vm14 = vcmp.eq.f32.partialorder %v4565_v24, %v3660_v59  ;;  %vm1301_vm1 = vcmp.lt.s32.totalorder %v1298_v62, %v1171_v18  ;;  %vm1303_vm0 = vcmp.lt.s32.totalorder %v1300_v3, %v1173_v26 }
 0x20d   : > { %v1175_v47 = vsel %vm4600_vm14, %v3549_v8, 256  ;;  %vm4601_vm13 = vcmp.eq.f32.partialorder %v4566_v37, %v3660_v59  ;;  %v1302_v41 = vsel %vm1301_vm1, %v1298_v62, %v1171_v18  ;;  %v1304_v32 = vsel %vm1303_vm0, %v1300_v3, %v1173_v26 }
 0x20e   : > { %vm1285_vm10 = vcmp.lt.s32.totalorder %v1283_v27, %v1284_v2  ;;  %v1177_v63 = vsel %vm4601_vm13, %v3552_v53, 256  ;;  %vm4603_vm15 = vcmp.eq.f32.partialorder %v4567_v38, %v3660_v59  ;;  %vm4605_vm9 = vcmp.eq.f32.partialorder %v4568_v14, %v3660_v59  ;;  %v4610_v38 = vld [vmem:[#allocation41_spill] sm:$0xff] }
 0x20f   : > { %v1286_v45 = vsel %vm1285_vm10, %v1283_v27, %v1284_v2  ;;  %v1179_v30 = vsel %vm4603_vm15, %v4602_v15, 256  ;;  %v1181_v24 = vsel %vm4605_vm9, %v4604_v36, 256  ;;  %vm1305_vm2 = vcmp.lt.s32.totalorder %v1302_v41, %v1175_v47  ;;  %v4611_v27 = vld [vmem:[#allocation15_spill] sm:$0xff]  ;;  %v4613_v2 = vld [vmem:[#allocation26_spill] sm:$0xff] }
 0x210   : > { %v1287_v22 = vrot.slane %v1286_v45, 2  ;;  %vm1307_vm3 = vcmp.lt.s32.totalorder %v1304_v32, %v1177_v63  ;;  %vm4608_vm11 = vcmp.eq.f32.partialorder %v4607_v51, %v3660_v59  ;;  %v1306_v48 = vsel %vm1305_vm2, %v1302_v41, %v1175_v47 }
 0x211   : > { %v1183_v37 = vsel %vm4608_vm11, %v4606_v57, 256  ;;  %v1308_v52 = vsel %vm1307_vm3, %v1304_v32, %v1177_v63  ;;  %vm1141_vm4 = vcmp.eq.f32.partialorder %v4609_v19, %v3660_v59  ;;  %vm4612_vm5 = vcmp.eq.f32.partialorder %v4611_v27, %v3660_v59  ;;  %v4621_v63 = vld [vmem:[#allocation29_spill] sm:$0xff]  ;;  %v4627_v27 = vld [vmem:[#allocation34_spill] sm:$0xff] }
 0x212   : > { %vm1288_vm8 = vcmp.lt.s32.totalorder %v1286_v45, %v1287_v22  ;;  %v1185_v14 = vsel %vm4612_vm5, %v4610_v38, 256  ;;  %vm1309_vm7 = vcmp.lt.s32.totalorder %v1306_v48, %v1179_v30  ;;  %vm1311_vm6 = vcmp.lt.s32.totalorder %v1308_v52, %v1181_v24 }
 0x213   : > { %v1289_v0 = vsel %vm1288_vm8, %v1286_v45, %v1287_v22  ;;  %vm1143_vm10 = vcmp.eq.f32.partialorder %v4613_v2, %v3660_v59  ;;  %vm1145_vm12 = vcmp.eq.f32.partialorder %v4614_v23, %v3660_v59  ;;  %vm4616_vm14 = vcmp.eq.f32.partialorder %v4571_v13, %v3660_v59  ;;  %v4619_v45 = vld [vmem:[#allocation28_spill] sm:$0xff] }
 0x214   : > { %v1290_v28 = vrot.slane %v1289_v0, 1  ;;  %v1187_v33 = vsel %vm4616_vm14, %v4615_v29, 256  ;;  %v1310_v18 = vsel %vm1309_vm7, %v1306_v48, %v1179_v30  ;;  %v1312_v26 = vsel %vm1311_vm6, %v1308_v52, %v1181_v24  ;;  %v4625_v24 = vld [vmem:[#allocation21_spill] sm:$0xff] }
 0x215   : > { %vm4617_vm1 = vcmp.eq.f32.partialorder %v4572_v25, %v3660_v59  ;;  %vm4618_vm0 = vcmp.eq.f32.partialorder %v4573_v5, %v3660_v59  ;;  %vm1313_vm13 = vcmp.lt.s32.totalorder %v1310_v18, %v1183_v37  ;;  %vm1315_vm15 = vcmp.lt.s32.totalorder %v1312_v26, %v1185_v14  ;;  %v4622_v5 = vld [vmem:[#allocation30_spill] sm:$0xff] }
 0x216   : > { %v1189_v62 = vsel %vm4617_vm1, %v3600_v54, 256  ;;  %v1191_v3 = vsel %vm4618_vm0, %v3603_v58, 256  ;;  %vm1291_vm9 = vcmp.lt.s32.totalorder %v1289_v0, %v1290_v28  ;;  %vm1147_vm2 = vcmp.eq.f32.partialorder %v4619_v45, %v3660_v59 }
 0x217   : > { %vm4620_vm3 = vcmp.eq.f32.partialorder %v4574_v34, %v3660_v59  ;;  %v1314_v47 = vsel %vm1313_vm13, %v1310_v18, %v1183_v37  ;;  %v1316_v22 = vsel %vm1315_vm15, %v1312_v26, %v1185_v14  ;;  %v3910_v25 = vsel %vm1291_vm9, %v1289_v0, %v1290_v28  ;;  %v4624_v34 = vld [vmem:[#allocation32_spill] sm:$0xff] }
 0x218   : > { %v1193_v13 = vsel %vm4620_vm3, %v3606_v60, 256  ;;  %vm1149_vm8 = vcmp.eq.f32.partialorder %v4621_v63, %v3660_v59  ;;  %vm1151_vm11 = vcmp.eq.f32.partialorder %v4622_v5, %v3660_v59  ;;  %vm4623_vm5 = vcmp.eq.f32.partialorder %v4575_v55, %v3660_v59 }
 0x219   : > { %v1195_v41 = vsel %vm4623_vm5, %v3609_v7, 256  ;;  %vm1317_vm7 = vcmp.lt.s32.totalorder %v1314_v47, %v1187_v33  ;;  %vm1319_vm6 = vcmp.lt.s32.totalorder %v1316_v22, %v1189_v62  ;;  %vm1153_vm14 = vcmp.eq.f32.partialorder %v4624_v34, %v3660_v59 }
 0x21a   : > { %v1318_v32 = vsel %vm1317_vm7, %v1314_v47, %v1187_v33  ;;  %v1320_v30 = vsel %vm1319_vm6, %v1316_v22, %v1189_v62  ;;  %vm1372_vm1 = vcmp.eq.s32.totalorder %v3523_v1, %v3910_v25  ;;  %vm1404_vm0 = vcmp.eq.s32.totalorder %v3603_v58, %v3910_v25  ;;  %v4629_v33 = vld [vmem:[#allocation23_spill] sm:$0xff] }
 0x21b   : > { %vm4626_vm13 = vcmp.eq.f32.partialorder %v4625_v24, %v3660_v59  ;;  %vm1321_vm15 = vcmp.lt.s32.totalorder %v1318_v32, %v1191_v3  ;;  %vm1323_vm9 = vcmp.lt.s32.totalorder %v1320_v30, %v1193_v13  ;;  %v2813_v48 = vmov 0.0   ;;  %v4632_v24 = vld [vmem:[#allocation36_spill] sm:$0xff] }
 0x21c   : > { %v1197_v51 = vsel %vm4626_vm13, %v3612_v4, 256  ;;  %v1322_v55 = vsel %vm1321_vm15, %v1318_v32, %v1191_v3  ;;  %v1324_v37 = vsel %vm1323_vm9, %v1320_v30, %v1193_v13  ;;  %v2344_v52 = vsel %vm1372_vm1, 1.0, %v2813_v48 }
 0x21d   : > { %v2376_v0 = vsel %vm1404_vm0, 1.0, %v2813_v48  ;;  %vm1155_vm3 = vcmp.eq.f32.partialorder %v4627_v27, %v3660_v59  ;;  %vm1325_vm5 = vcmp.lt.s32.totalorder %v1322_v55, %v1195_v41  ;;  %vm1327_vm7 = vcmp.lt.s32.totalorder %v1324_v37, %v1197_v51 }
 0x21e   : > { %v2572_v14 = vpack.i.bf16 %v2376_v0, %v2344_v52  ;;  %vm4628_vm6 = vcmp.eq.f32.partialorder %v4577_v42, %v3660_v59  ;;  %vm4630_vm13 = vcmp.eq.f32.partialorder %v4629_v33, %v3660_v59  ;;  %v1326_v26 = vsel %vm1325_vm5, %v1322_v55, %v1195_v41 }
 0x21f   : > { %v1199_v28 = vsel %vm4628_vm6, %v3615_v61, 256  ;;  %v1201_v18 = vsel %vm4630_vm13, %v3618_v16, 256  ;;  %v1328_v62 = vsel %vm1327_vm7, %v1324_v37, %v1197_v51  ;;  %vm1374_vm15 = vcmp.eq.s32.totalorder %v3526_v21, %v3910_v25 }
 0x220   : > { %vm1329_vm1 = vcmp.lt.s32.totalorder %v1326_v26, %v1199_v28  ;;  %vm1331_vm0 = vcmp.lt.s32.totalorder %v1328_v62, %v1201_v18  ;;  %2573 = vxpose.xlu2.b32.start [1/16] %v2572_v14, 128  ;;  %vm1406_vm9 = vcmp.eq.s32.totalorder %v3606_v60, %v3910_v25  ;;  %vm4631_vm6 = vcmp.eq.f32.partialorder %v4579_v20, %v3660_v59 }
 0x221   : > { %v1203_v42 = vsel %vm4631_vm6, %v3621_v35, 256  ;;  %v1205_v3 = vsel %vm1141_vm4, %v3624_v39, 256  ;;  %v1330_v13 = vsel %vm1329_vm1, %v1326_v26, %v1199_v28  ;;  %v1332_v47 = vsel %vm1331_vm0, %v1328_v62, %v1201_v18 }
 0x222   : > { %v1207_v22 = vsel %vm1143_vm10, %v4588_v17, 256  ;;  %v1209_v41 = vsel %vm1145_vm12, %v4589_v44, 256  ;;  %vm1333_vm5 = vcmp.lt.s32.totalorder %v1330_v13, %v1203_v42  ;;  %vm1335_vm7 = vcmp.lt.s32.totalorder %v1332_v47, %v1205_v3 }
 0x223   : > { %v1334_v20 = vsel %vm1333_vm5, %v1330_v13, %v1203_v42  ;;  %v1336_v32 = vsel %vm1335_vm7, %v1332_v47, %v1205_v3  ;;  %v2346_v30 = vsel %vm1374_vm15, 1.0, %v2813_v48  ;;  %v2378_v19 = vsel %vm1406_vm9, 1.0, %v2813_v48 }
 0x224   : > { %vm1157_vm4 = vcmp.eq.f32.partialorder %v4632_v24, %v3660_v59  ;;  %v1211_v2 = vsel %vm1147_vm2, %v4592_v6, 256  ;;  %vm1337_vm10 = vcmp.lt.s32.totalorder %v1334_v20, %v1207_v22  ;;  %vm1339_vm13 = vcmp.lt.s32.totalorder %v1336_v32, %v1209_v41 }
 0x225   : > { %v1213_v23 = vsel %vm1149_vm8, %v4593_v11, 256  ;;  %v1215_v51 = vsel %vm1151_vm11, %v4594_v50, 256  ;;  %v1338_v55 = vsel %vm1337_vm10, %v1334_v20, %v1207_v22  ;;  %v1340_v37 = vsel %vm1339_vm13, %v1336_v32, %v1209_v41 }
 0x226   : > { %v1217_v45 = vsel %vm1153_vm14, %v3746_v9, 256  ;;  %vm1341_vm12 = vcmp.lt.s32.totalorder %v1338_v55, %v1211_v2  ;;  %vm1343_vm2 = vcmp.lt.s32.totalorder %v1340_v37, %v1213_v23  ;;  %v2574_v52 = vpack.i.bf16 %v2378_v19, %v2346_v30 }
 0x227   : > { %v1219_v63 = vsel %vm1155_vm3, %v3749_v43, 256  ;;  %v1221_v0 = vsel %vm1157_vm4, %v3760_v31, 256  ;;  %v1342_v14 = vsel %vm1341_vm12, %v1338_v55, %v1211_v2  ;;  %v1344_v5 = vsel %vm1343_vm2, %v1340_v37, %v1213_v23 }
 0x228   : > { %vm1345_vm8 = vcmp.lt.s32.totalorder %v1342_v14, %v1215_v51  ;;  %vm1347_vm11 = vcmp.lt.s32.totalorder %v1344_v5, %v1217_v45  ;;  %2575 = vxpose.xlu2.b32.cont [2/16] %v2574_v52, 128  ;;  %vm1376_vm1 = vcmp.eq.s32.totalorder %v3531_v12, %v3910_v25  ;;  %vm1408_vm14 = vcmp.eq.s32.totalorder %v3609_v7, %v3910_v25 }
 0x229   : > { %v1346_v34 = vsel %vm1345_vm8, %v1342_v14, %v1215_v51  ;;  %v1348_v28 = vsel %vm1347_vm11, %v1344_v5, %v1217_v45  ;;  %vm1378_vm0 = vcmp.eq.s32.totalorder %v3534_v49, %v3910_v25  ;;  %vm1410_vm3 = vcmp.eq.s32.totalorder %v3612_v4, %v3910_v25 }
 0x22a   : > { %vm1349_vm15 = vcmp.lt.s32.totalorder %v1346_v34, %v1219_v63  ;;  %vm1351_vm9 = vcmp.lt.s32.totalorder %v1348_v28, %v1221_v0  ;;  %v2348_v33 = vsel %vm1376_vm1, 1.0, %v2813_v48  ;;  %v2380_v18 = vsel %vm1408_vm14, 1.0, %v2813_v48 }
 0x22b   : > { %v1350_v59 = vsel %vm1349_vm15, %v1346_v34, %v1219_v63  ;;  %v1352_v27 = vsel %vm1351_vm9, %v1348_v28, %v1221_v0  ;;  %v2350_v26 = vsel %vm1378_vm0, 1.0, %v2813_v48  ;;  %v2382_v62 = vsel %vm1410_vm3, 1.0, %v2813_v48 }
 0x22c   : > { %vm1353_vm6 = vcmp.lt.s32.totalorder %v1350_v59, %v1352_v27  ;;  %v2576_v13 = vpack.i.bf16 %v2380_v18, %v2348_v33  ;;  %vm1388_vm5 = vcmp.eq.s32.totalorder %v3549_v8, %v3910_v25  ;;  %vm1420_vm7 = vcmp.eq.s32.totalorder %v4588_v17, %v3910_v25 }
 0x22d   : > { %v1354_v42 = vsel %vm1353_vm6, %v1350_v59, %v1352_v27  ;;  %v2578_v47 = vpack.i.bf16 %v2382_v62, %v2350_v26  ;;  %v4004_v22 = vsel %vm1388_vm5, 1.0, %v2813_v48  ;;  %v4007_v41 = vsel %vm1420_vm7, 1.0, %v2813_v48 }
 0x22e   : > { %v1355_v3 = vrot.slane %v1354_v42, 4  ;;  %vm1390_vm4 = vcmp.eq.s32.totalorder %v3552_v53, %v3910_v25  ;;  %vm1380_vm13 = vcmp.eq.s32.totalorder %v3537_v10, %v3910_v25  ;;  %vm1412_vm12 = vcmp.eq.s32.totalorder %v3615_v61, %v3910_v25 }
 0x22f   : > { %v2588_v20 = vpack.i.bf16 %v4007_v41, %v4004_v22  ;;  %vm1422_vm2 = vcmp.eq.s32.totalorder %v4589_v44, %v3910_v25  ;;  %v4020_v32 = vsel %vm1390_vm4, 1.0, %v2813_v48  ;;  %vm1392_vm8 = vcmp.eq.s32.totalorder %v4602_v15, %v3910_v25 }
 0x230   : > { %vm1356_vm10 = vcmp.lt.s32.totalorder %v1354_v42, %v1355_v3  ;;  %2577 = vxpose.xlu2.b32.cont [3/16] %v2576_v13, 128  ;;  %v4023_v19 = vsel %vm1422_vm2, 1.0, %v2813_v48  ;;  %vm1424_vm11 = vcmp.eq.s32.totalorder %v4592_v6, %v3910_v25  ;;  %v4032_v23 = vsel %vm1392_vm8, 1.0, %v2813_v48 }
 0x231   : > { %v1357_v30 = vsel %vm1356_vm10, %v1354_v42, %v1355_v3  ;;  %v2590_v2 = vpack.i.bf16 %v4023_v19, %v4020_v32  ;;  %v4035_v51 = vsel %vm1424_vm11, 1.0, %v2813_v48  ;;  %vm1394_vm1 = vcmp.eq.s32.totalorder %v4604_v36, %v3910_v25 }
 0x232   : > { %v1358_v24 = vrot.slane %v1357_v30, 2  ;;  %v2592_v55 = vpack.i.bf16 %v4035_v51, %v4032_v23  ;;  %vm1426_vm14 = vcmp.eq.s32.totalorder %v4593_v11, %v3910_v25  ;;  %vm1396_vm0 = vcmp.eq.s32.totalorder %v4606_v57, %v3910_v25 }
 0x233   : > { %v4046_v37 = vsel %vm1394_vm1, 1.0, %v2813_v48  ;;  %v4049_v45 = vsel %vm1426_vm14, 1.0, %v2813_v48  ;;  %vm1428_vm15 = vcmp.eq.s32.totalorder %v4594_v50, %v3910_v25  ;;  %v4056_v0 = vsel %vm1396_vm0, 1.0, %v2813_v48 }
 0x234   : > { %vm1359_vm3 = vcmp.lt.s32.totalorder %v1357_v30, %v1358_v24  ;;  %v2594_v63 = vpack.i.bf16 %v4049_v45, %v4046_v37  ;;  %v4059_v14 = vsel %vm1428_vm15, 1.0, %v2813_v48  ;;  %vm1398_vm9 = vcmp.eq.s32.totalorder %v4610_v38, %v3910_v25 }
 0x235   : > { %v1360_v52 = vsel %vm1359_vm3, %v1357_v30, %v1358_v24  ;;  %v2596_v34 = vpack.i.bf16 %v4059_v14, %v4056_v0  ;;  %vm1430_vm6 = vcmp.eq.s32.totalorder %v3746_v9, %v3910_v25  ;;  %v4068_v28 = vsel %vm1398_vm9, 1.0, %v2813_v48 }
 0x236   : > { %v1361_v5 = vrot.slane %v1360_v52, 1  ;;  %v4071_v59 = vsel %vm1430_vm6, 1.0, %v2813_v48  ;;  %vm1400_vm5 = vcmp.eq.s32.totalorder %v4615_v29, %v3910_v25  ;;  %vm1432_vm7 = vcmp.eq.s32.totalorder %v3749_v43, %v3910_v25 }
 0x237   : > { %v2598_v27 = vpack.i.bf16 %v4071_v59, %v4068_v28  ;;  %v4080_v33 = vsel %vm1400_vm5, 1.0, %v2813_v48  ;;  %v4083_v18 = vsel %vm1432_vm7, 1.0, %v2813_v48  ;;  %vm1402_vm10 = vcmp.eq.s32.totalorder %v3600_v54, %v3910_v25 }
 0x238   : > { %vm1362_vm4 = vcmp.lt.s32.totalorder %v1360_v52, %v1361_v5  ;;  %2579 = vxpose.xlu2.b32.cont [4/16] %v2578_v47, 128  ;;  %v2600_v62 = vpack.i.bf16 %v4083_v18, %v4080_v33  ;;  %vm1434_vm11 = vcmp.eq.s32.totalorder %v3760_v31, %v3910_v25  ;;  %v2814_v42 = vmov 1.0  }
 0x239   : > { %v4085_v26 = vsel %vm1362_vm4, %v1360_v52, %v1361_v5  ;;  %v2352_v3 = vsel %vm1380_vm13, 1.0, %v2813_v48  ;;  %v4108_v13 = vsel %vm1402_vm10, 1.0, %v2813_v48  ;;  %vm1382_vm0 = vcmp.eq.s32.totalorder %v3540_v56, %v3910_v25 }
 0x23a   : > { %vm1403_vm2 = vcmp.eq.s32.totalorder %v3600_v54, %v4085_v26  ;;  %vm1435_vm8 = vcmp.eq.s32.totalorder %v3760_v31, %v4085_v26  ;;  %v2384_v54 = vsel %vm1412_vm12, 1.0, %v2813_v48  ;;  %vm1401_vm1 = vcmp.eq.s32.totalorder %v4615_v29, %v4085_v26 }
 0x23b   : > { %2490 = vmatpush.lsf.msk.msk.msrb.mxu2 %vm1403_vm2, %v2814_v42  ;;  %2506 = vmatpush.lsf.msk.msk.msrb.mxu3 %vm1435_vm8, %v2814_v42  ;;  %vm1433_vm14 = vcmp.eq.s32.totalorder %v3749_v43, %v4085_v26  ;;  %v4120_v31 = vsel %vm1434_vm11, 1.0, %v2813_v48  ;;  %vm1399_vm13 = vcmp.eq.s32.totalorder %v4610_v38, %v4085_v26  ;;  %vm1431_vm12 = vcmp.eq.s32.totalorder %v3746_v9, %v4085_v26 }
 0x23c   : > { %v2580_v47 = vpack.i.bf16 %v2384_v54, %v2352_v3  ;;  %v1364_v43 = vrot.slane %v4085_v26, 7  ;;  %vm1397_vm3 = vcmp.eq.s32.totalorder %v4606_v57, %v4085_v26  ;;  %vm1429_vm15 = vcmp.eq.s32.totalorder %v4594_v50, %v4085_v26 }
 0x23d   : > { %2491 = vmatpush.lsf.msk.msk.msrb.mxu2 %vm1401_vm1, %v2814_v42  ;;  %2507 = vmatpush.lsf.msk.msk.msrb.mxu3 %vm1433_vm14, %v2814_v42  ;;  %vm1414_vm9 = vcmp.eq.s32.totalorder %v3618_v16, %v3910_v25  ;;  %vm1365_vm6 = vcmask 1040384   ;;  %vm1395_vm5 = vcmp.eq.s32.totalorder %v4604_v36, %v4085_v26  ;;  %vm1427_vm7 = vcmp.eq.s32.totalorder %v4593_v11, %v4085_v26 }
 0x23e   : > { %v2354_v9 = vsel %vm1382_vm0, 1.0, %v2813_v48  ;;  %v2386_v50 = vsel %vm1414_vm9, 1.0, %v2813_v48  ;;  %v2602_v57 = vpack.i.bf16 %v4120_v31, %v4108_v13  ;;  %v1366_v38 = vsel %vm1365_vm6, %v3910_v25, %v1364_v43  ;;  %v2684_v43 = vld [vmem:[%s2904_s9] sm:$0xff] }
 0x23f   : > { %2492 = vmatpush.lsf.msk.msk.msrb.mxu2 %vm1399_vm13, %v2814_v42  ;;  %2508 = vmatpush.lsf.msk.msk.msrb.mxu3 %vm1431_vm12, %v2814_v42  ;;  %v4633_v29 = vlaneseq  ;;  %vm1393_vm10 = vcmp.eq.s32.totalorder %v4602_v15, %v4085_v26  ;;  %vm1425_vm2 = vcmp.eq.s32.totalorder %v4592_v6, %v4085_v26  ;;  %vm1391_vm8 = vcmp.eq.s32.totalorder %v3552_v53, %v4085_v26 }
 0x240   : > { %2581 = vxpose.xlu2.b32.cont [5/16] %v2580_v47, 128  ;;  %vm1423_vm11 = vcmp.eq.s32.totalorder %v4589_v44, %v4085_v26  ;;  %v2582_v11 = vpack.i.bf16 %v2386_v50, %v2354_v9  ;;  %vm1389_vm1 = vcmp.eq.s32.totalorder %v3549_v8, %v4085_v26  ;;  %vm1421_vm14 = vcmp.eq.s32.totalorder %v4588_v17, %v4085_v26 }
 0x241   : > { %2493 = vmatpush.lsf.msk.msk.msrb.mxu2 %vm1397_vm3, %v2814_v42  ;;  %2509 = vmatpush.lsf.msk.msk.msrb.mxu3 %vm1429_vm15, %v2814_v42  ;;  %vm1369_vm4 = vcmp.lt.s32.totalorder %v4633_v29, 256  ;;  %vm1384_vm13 = vcmp.eq.s32.totalorder %v3543_v46, %v3910_v25  ;;  %vm1416_vm12 = vcmp.eq.s32.totalorder %v3621_v35, %v3910_v25  ;;  %vm1387_vm0 = vcmp.eq.s32.totalorder %v4598_v40, %v4085_v26 }
 0x242   : > { %1371 = vst.msk [vmem:[%s4156_s10] sm:$0x3] %vm1369_vm4, %v1366_v38  ;;  %vm1419_vm3 = vcmp.eq.s32.totalorder %v3624_v39, %v4085_v26  ;;  %v2356_v8 = vsel %vm1384_vm13, 1.0, %v2813_v48  ;;  %v2388_v53 = vsel %vm1416_vm12, 1.0, %v2813_v48  ;;  %vm1385_vm15 = vcmp.eq.s32.totalorder %v3543_v46, %v4085_v26 }
 0x243   : > { %2494 = vmatpush.lsf.msk.msk.msrb.mxu2 %vm1395_vm5, %v2814_v42  ;;  %2510 = vmatpush.lsf.msk.msk.msrb.mxu3 %vm1427_vm7, %v2814_v42  ;;  %vm1417_vm9 = vcmp.eq.s32.totalorder %v3621_v35, %v4085_v26  ;;  %vm1383_vm6 = vcmp.eq.s32.totalorder %v3540_v56, %v4085_v26  ;;  %vm1415_vm5 = vcmp.eq.s32.totalorder %v3618_v16, %v4085_v26 }
 0x244   : > { %v2584_v17 = vpack.i.bf16 %v2388_v53, %v2356_v8  ;;  %vm1381_vm7 = vcmp.eq.s32.totalorder %v3537_v10, %v4085_v26  ;;  %vm1413_vm4 = vcmp.eq.s32.totalorder %v3615_v61, %v4085_v26  ;;  %vm1375_vm13 = vcmp.eq.s32.totalorder %v3526_v21, %v4085_v26 }
 0x245   : > { %2495 = vmatpush.lsf.msk.msk.msrb.mxu2 %vm1393_vm10, %v2814_v42  ;;  %2511 = vmatpush.lsf.msk.msk.msrb.mxu3 %vm1425_vm2, %v2814_v42  ;;  %vm1386_vm10 = vcmp.eq.s32.totalorder %v4598_v40, %v3910_v25  ;;  %vm1418_vm2 = vcmp.eq.s32.totalorder %v3624_v39, %v3910_v25  ;;  %vm1407_vm12 = vcmp.eq.s32.totalorder %v3606_v60, %v4085_v26 }
 0x246   : > { %v2358_v61 = vsel %vm1386_vm10, 1.0, %v2813_v48  ;;  %v2390_v16 = vsel %vm1418_vm2, 1.0, %v2813_v48 }
 0x247   : > { %2496 = vmatpush.lsf.msk.msk.msrb.mxu2 %vm1391_vm8, %v2814_v42  ;;  %2512 = vmatpush.lsf.msk.msk.msrb.mxu3 %vm1423_vm11, %v2814_v42  ;;  %vm1379_vm8 = vcmp.eq.s32.totalorder %v3534_v49, %v4085_v26  ;;  %vm1411_vm11 = vcmp.eq.s32.totalorder %v3612_v4, %v4085_v26  ;;  %v2586_v35 = vpack.i.bf16 %v2390_v16, %v2358_v61 }
 0x248   : > { %2583 = vxpose.xlu2.b32.cont [6/16] %v2582_v11, 128  ;;  %v2685_v11 = vld [vmem:[%s2904_s9 + $0x8] sm:$0xff] }
 0x249   : > { %2497 = vmatpush.lsf.msk.msk.msrb.mxu2 %vm1389_vm1, %v2814_v42  ;;  %2513 = vmatpush.lsf.msk.msk.msrb.mxu3 %vm1421_vm14, %v2814_v42  ;;  %vm1377_vm1 = vcmp.eq.s32.totalorder %v3531_v12, %v4085_v26  ;;  %vm1409_vm14 = vcmp.eq.s32.totalorder %v3609_v7, %v4085_v26 }
 0x24b   : > { %2498 = vmatpush.lsf.msk.msk.msrb.mxu2 %vm1387_vm0, %v2814_v42  ;;  %2514 = vmatpush.lsf.msk.msk.msrb.mxu3 %vm1419_vm3, %v2814_v42  ;;  %vm1373_vm0 = vcmp.eq.s32.totalorder %v3523_v1, %v4085_v26  ;;  %vm1405_vm3 = vcmp.eq.s32.totalorder %v3603_v58, %v4085_v26 }
 0x24d   : > { %2499 = vmatpush.lsf.msk.msk.msrb.mxu2 %vm1385_vm15, %v2814_v42  ;;  %2515 = vmatpush.lsf.msk.msk.msrb.mxu3 %vm1417_vm9, %v2814_v42  ;;  %vm4634_vm15 = vcmask 261120  }
 0x24e   : > { %vm4635_vm9 = vmmov %vm4634_vm15 }
 0x24f   : > { %2500 = vmatpush.lsf.msk.msk.msrb.mxu2 %vm1383_vm6, %v2814_v42  ;;  %2516 = vmatpush.lsf.msk.msk.msrb.mxu3 %vm1415_vm5, %v2814_v42  ;;  %vm4636_vm6 = vmmov %vm4635_vm9 }
 0x250   : > { %2585 = vxpose.xlu2.b32.cont [7/16] %v2584_v17, 128  ;;  %vm4637_vm5 = vmmov %vm4636_vm6 }
 0x251   : > { %2501 = vmatpush.lsf.msk.msk.msrb.mxu2 %vm1381_vm7, %v2814_v42  ;;  %2517 = vmatpush.lsf.msk.msk.msrb.mxu3 %vm1413_vm4, %v2814_v42  ;;  %vm4638_vm7 = vmmov %vm4637_vm5 }
 0x252   : > { %vm4639_vm4 = vmmov %vm4637_vm5 }
 0x253   : > { %2502 = vmatpush.lsf.msk.msk.msrb.mxu2 %vm1379_vm8, %v2814_v42  ;;  %2518 = vmatpush.lsf.msk.msk.msrb.mxu3 %vm1411_vm11, %v2814_v42  ;;  %vm4640_vm10 = vmmov %vm4639_vm4 }
 0x254   : > { %vm4641_vm2 = vmmov %vm4639_vm4 }
 0x255   : > { %2503 = vmatpush.lsf.msk.msk.msrb.mxu2 %vm1377_vm1, %v2814_v42  ;;  %2519 = vmatpush.lsf.msk.msk.msrb.mxu3 %vm1409_vm14, %v2814_v42  ;;  %vm4642_vm8 = vmmov %vm4641_vm2 }
 0x256   : > { %vm4643_vm11 = vmmov %vm4641_vm2 }
 0x257   : > { %2504 = vmatpush.lsf.msk.msk.msrb.mxu2 %vm1375_vm13, %v2814_v42  ;;  %2520 = vmatpush.lsf.msk.msk.msrb.mxu3 %vm1407_vm12, %v2814_v42  ;;  %vm4644_vm1 = vmmov %vm4641_vm2 }
 0x258   : > { %2587 = vxpose.xlu2.b32.cont [8/16] %v2586_v35, 128  ;;  %vm4645_vm14 = vmmov %vm4644_vm1 }
 0x259   : > { %2505 = vmatpush.lsf.msk.msk.msrb.mxu2 %vm1373_vm0, %v2814_v42  ;;  %2521 = vmatpush.lsf.msk.msk.msrb.mxu3 %vm1405_vm3, %v2814_v42  ;;  %vm4646_vm13 = vmmov %vm4644_vm1 }
 0x25a   : > { %2434 = vllmr.16.mxu2  ;;  %2473 = vllmr.16.mxu3  ;;  %vm4647_vm12 = vmmov %vm4644_vm1 }
 0x25b   : > { %vm4648_vm0 = vmmov %vm4644_vm1 }
 0x25c   : > { %vm4649_vm3 = vmmov %vm4648_vm0 }
 0x260   : > { %2589 = vxpose.xlu2.b32.cont [9/16] %v2588_v20, 128 }
 0x268   : > { %2591 = vxpose.xlu2.b32.cont [10/16] %v2590_v2, 128 }
 0x270   : > { %2593 = vxpose.xlu2.b32.cont [11/16] %v2592_v55, 128 }
 0x278   : > { %2595 = vxpose.xlu2.b32.cont [12/16] %v2594_v63, 128 }
 0x280   : > { %2597 = vxpose.xlu2.b32.cont [13/16] %v2596_v34, 128 }
 0x288   : > { %2599 = vxpose.xlu2.b32.cont [14/16] %v2598_v27, 128 }
 0x290   : > { %2601 = vxpose.xlu2.b32.cont [15/16] %v2600_v62, 128 }
 0x298   : > { %2603 = vxpose.xlu2.b32.end [16/16] %v2602_v57, 128 }
 0x2b9   : > { %v2604_v39 = vpop.trf.xlu2 }
 0x2ba   : > { %v2605_v58 = vunpack.i.l.bf16 %v2604_v39  ;;  %v2608_v4 = vunpack.i.h.bf16 %v2604_v39 }
 0x2bc   : > { %1708 = vmatmul.f32.vlgmr.msra.gmra.mxu2 %v2605_v58  ;;  %1821 = vmatmul.f32.vlgmr.msra.gmra.mxu3 %v2608_v4  ;;  %v2686_v4 = vld [vmem:[%s2904_s9 + $0x10] sm:$0xff] }
 0x2c1   : > { %v2609_v7 = vpop.trf.xlu2 }
 0x2c2   : > { %v2610_v60 = vunpack.i.l.bf16 %v2609_v7  ;;  %v2613_v1 = vunpack.i.h.bf16 %v2609_v7 }
 0x2c4   : > { %1711 = vmatmul.f32.gmra.mxu2 %v2610_v60  ;;  %1824 = vmatmul.f32.gmra.mxu3 %v2613_v1 }
 0x2c9   : > { %v2614_v21 = vpop.trf.xlu2 }
 0x2ca   : > { %v2615_v12 = vunpack.i.l.bf16 %v2614_v21  ;;  %v2618_v49 = vunpack.i.h.bf16 %v2614_v21 }
 0x2cc   : > { %1714 = vmatmul.f32.gmra.mxu2 %v2615_v12  ;;  %1827 = vmatmul.f32.gmra.mxu3 %v2618_v49 }
 0x2d1   : > { %v2619_v10 = vpop.trf.xlu2 }
 0x2d2   : > { %v2620_v56 = vunpack.i.l.bf16 %v2619_v10  ;;  %v2623_v46 = vunpack.i.h.bf16 %v2619_v10 }
 0x2d4   : > { %1717 = vmatmul.f32.gmra.mxu2 %v2620_v56  ;;  %1830 = vmatmul.f32.gmra.mxu3 %v2623_v46  ;;  %v2687_v56 = vld [vmem:[%s2904_s9 + $0x18] sm:$0xff] }
 0x2d9   : > { %v2624_v44 = vpop.trf.xlu2 }
 0x2da   : > { %v2625_v6 = vunpack.i.l.bf16 %v2624_v44  ;;  %v2628_v40 = vunpack.i.h.bf16 %v2624_v44 }
 0x2dc   : > { %1720 = vmatmul.f32.gmra.mxu2 %v2625_v6  ;;  %1833 = vmatmul.f32.gmra.mxu3 %v2628_v40 }
 0x2e1   : > { %v2629_v15 = vpop.trf.xlu2 }
 0x2e2   : > { %v2630_v36 = vunpack.i.l.bf16 %v2629_v15  ;;  %v2633_v25 = vunpack.i.h.bf16 %v2629_v15 }
 0x2e4   : > { %1723 = vmatmul.f32.gmra.mxu2 %v2630_v36  ;;  %1836 = vmatmul.f32.gmra.mxu3 %v2633_v25 }
 0x2e9   : > { %v2634_v48 = vpop.trf.xlu2 }
 0x2ea   : > { %v2635_v22 = vunpack.i.l.bf16 %v2634_v48  ;;  %v2638_v41 = vunpack.i.h.bf16 %v2634_v48  ;;  %v2688_v48 = vld [vmem:[%s2904_s9 + $0x20] sm:$0xff] }
 0x2ec   : > { %1726 = vmatmul.f32.gmra.mxu2 %v2635_v22  ;;  %1839 = vmatmul.f32.gmra.mxu3 %v2638_v41 }
 0x2f1   : > { %v2639_v20 = vpop.trf.xlu2 }
 0x2f2   : > { %v2640_v32 = vunpack.i.l.bf16 %v2639_v20  ;;  %v2643_v30 = vunpack.i.h.bf16 %v2639_v20 }
 0x2f4   : > { %1729 = vmatmul.f32.gmra.mxu2 %v2640_v32  ;;  %1842 = vmatmul.f32.gmra.mxu3 %v2643_v30 }
 0x2f9   : > { %v2644_v19 = vpop.trf.xlu2 }
 0x2fa   : > { %v2645_v24 = vunpack.i.l.bf16 %v2644_v19  ;;  %v2648_v2 = vunpack.i.h.bf16 %v2644_v19 }
 0x2fc   : > { %1732 = vmatmul.f32.gmra.mxu2 %v2645_v24  ;;  %1845 = vmatmul.f32.gmra.mxu3 %v2648_v2  ;;  %v2689_v2 = vld [vmem:[%s2904_s9 + $0x28] sm:$0xff] }
 0x301   : > { %v2649_v23 = vpop.trf.xlu2 }
 0x302   : > { %v2650_v51 = vunpack.i.l.bf16 %v2649_v23  ;;  %v2653_v55 = vunpack.i.h.bf16 %v2649_v23 }
 0x304   : > { %1735 = vmatmul.f32.gmra.mxu2 %v2650_v51  ;;  %1848 = vmatmul.f32.gmra.mxu3 %v2653_v55 }
 0x309   : > { %v2654_v37 = vpop.trf.xlu2 }
 0x30a   : > { %v2655_v45 = vunpack.i.l.bf16 %v2654_v37  ;;  %v2658_v52 = vunpack.i.h.bf16 %v2654_v37 }
 0x30c   : > { %1738 = vmatmul.f32.gmra.mxu2 %v2655_v45  ;;  %1851 = vmatmul.f32.gmra.mxu3 %v2658_v52 }
 0x311   : > { %v2659_v63 = vpop.trf.xlu2 }
 0x312   : > { %v2660_v0 = vunpack.i.l.bf16 %v2659_v63  ;;  %v2663_v14 = vunpack.i.h.bf16 %v2659_v63 }
 0x314   : > { %1741 = vmatmul.f32.gmra.mxu2 %v2660_v0  ;;  %1854 = vmatmul.f32.gmra.mxu3 %v2663_v14  ;;  %v2690_v0 = vld [vmem:[%s2904_s9 + $0x30] sm:$0xff] }
 0x319   : > { %v2664_v5 = vpop.trf.xlu2 }
 0x31a   : > { %v2665_v34 = vunpack.i.l.bf16 %v2664_v5  ;;  %v2668_v28 = vunpack.i.h.bf16 %v2664_v5 }
 0x31c   : > { %1744 = vmatmul.f32.gmra.mxu2 %v2665_v34  ;;  %1857 = vmatmul.f32.gmra.mxu3 %v2668_v28 }
 0x321   : > { %v2669_v59 = vpop.trf.xlu2 }
 0x322   : > { %v2670_v27 = vunpack.i.l.bf16 %v2669_v59  ;;  %v2673_v33 = vunpack.i.h.bf16 %v2669_v59 }
 0x324   : > { %1747 = vmatmul.f32.gmra.mxu2 %v2670_v27  ;;  %1860 = vmatmul.f32.gmra.mxu3 %v2673_v33 }
 0x329   : > { %v2674_v18 = vpop.trf.xlu2 }
 0x32a   : > { %v2675_v26 = vunpack.i.l.bf16 %v2674_v18  ;;  %v2678_v62 = vunpack.i.h.bf16 %v2674_v18  ;;  %v2691_v18 = vld [vmem:[%s2904_s9 + $0x38] sm:$0xff] }
 0x32c   : > { %1750 = vmatmul.f32.gmra.mxu2 %v2675_v26  ;;  %1863 = vmatmul.f32.gmra.mxu3 %v2678_v62 }
 0x331   : > { %v2679_v42 = vpop.trf.xlu2 }
 0x332   : > { %v2680_v3 = vunpack.i.l.bf16 %v2679_v42  ;;  %v2683_v54 = vunpack.i.h.bf16 %v2679_v42 }
 0x334   : > { %1753 = vmatmul.f32.gmra.mxu2 %v2680_v3  ;;  %1866 = vmatmul.f32.gmra.mxu3 %v2683_v54 }
 0x33c   : > { %2435 = vmatmul.lmr.bf16.gmra.16.mxu2  ;;  %2474 = vmatmul.lmr.bf16.gmra.16.mxu3 }
 0x33f   : > { %v1709_v13 = vpop.f32.mrf.mxu2  ;;  %v1822_v31 = vpop.f32.mrf.mxu3 }
 0x340   : > { %v1823_v47 = vadd.f32 %v1822_v31, %v1709_v13 }
 0x342   : > { %1918 = vst.msk [vmem:[%s4262_s13] sm:$0xff] %vm4634_vm15, %v1823_v47  ;;  %v1950_v9 = vsub.f32 %v1823_v47, %v2684_v43  ;;  %vm4650_vm15 = vmmov %vm4648_vm0  ;;  %v2692_v47 = vld [vmem:[%s2904_s9 + $0x40] sm:$0xff] }
 0x344   : > { %2436 = vmatmul.lmr.bf16.gmra.16.mxu2  ;;  %2475 = vmatmul.lmr.bf16.gmra.16.mxu3  ;;  %v1982_v29 = vmul.f32 %v1950_v9, %v1950_v9 }
 0x346   : > { %v2014_v17 = vsel %vm4636_vm6, %v1982_v29, 0.0  ;;  %vm4652_vm6 = vmmov %vm4648_vm0 }
 0x347   : > { %v1712_v50 = vpop.f32.mrf.mxu2  ;;  %v1825_v57 = vpop.f32.mrf.mxu3 }
 0x348   : > { %v1826_v38 = vadd.f32 %v1825_v57, %v1712_v50 }
 0x34a   : > { %1919 = vst.msk [vmem:[%s4262_s13 + $0x8] sm:$0xff] %vm4635_vm9, %v1826_v38  ;;  %v1951_v8 = vsub.f32 %v1826_v38, %v2685_v11  ;;  %vm4651_vm9 = vmmov %vm4648_vm0 }
 0x34c   : > { %v1983_v53 = vmul.f32 %v1951_v8, %v1951_v8  ;;  %2437 = vmatmul.lmr.bf16.gmra.16.mxu2  ;;  %2476 = vmatmul.lmr.bf16.gmra.16.mxu3  ;;  %v2693_v8 = vld [vmem:[%s2904_s9 + $0x48] sm:$0xff] }
 0x34e   : > { %v2015_v61 = vsel %vm4637_vm5, %v1983_v53, 0.0  ;;  %vm4653_vm5 = vmmov %vm4648_vm0 }
 0x34f   : > { %v2016_v16 = vadd.f32 %v2015_v61, %v2014_v17  ;;  %v1715_v35 = vpop.f32.mrf.mxu2  ;;  %v1828_v39 = vpop.f32.mrf.mxu3 }
 0x350   : > { %v1829_v58 = vadd.f32 %v1828_v39, %v1715_v35 }
 0x352   : > { %1920 = vst.msk [vmem:[%s4262_s13 + $0x10] sm:$0xff] %vm4638_vm7, %v1829_v58  ;;  %v1952_v7 = vsub.f32 %v1829_v58, %v2686_v4  ;;  %vm4654_vm7 = vmmov %vm4648_vm0  ;;  %v2694_v4 = vld [vmem:[%s2904_s9 + $0x50] sm:$0xff] }
 0x354   : > { %v1984_v60 = vmul.f32 %v1952_v7, %v1952_v7  ;;  %2438 = vmatmul.lmr.bf16.gmra.16.mxu2  ;;  %2477 = vmatmul.lmr.bf16.gmra.16.mxu3 }
 0x356   : > { %v2017_v1 = vsel %vm4639_vm4, %v1984_v60, 0.0  ;;  %vm4655_vm4 = vmmov %vm4648_vm0 }
 0x357   : > { %v2018_v21 = vadd.f32 %v2017_v1, %v2016_v16  ;;  %v1718_v12 = vpop.f32.mrf.mxu2  ;;  %v1831_v49 = vpop.f32.mrf.mxu3 }
 0x358   : > { %v1832_v10 = vadd.f32 %v1831_v49, %v1718_v12 }
 0x35a   : > { %1921 = vst.msk [vmem:[%s4262_s13 + $0x18] sm:$0xff] %vm4640_vm10, %v1832_v10  ;;  %v1953_v46 = vsub.f32 %v1832_v10, %v2687_v56  ;;  %vm4656_vm10 = vmmov %vm4648_vm0  ;;  %v2695_v56 = vld [vmem:[%s2904_s9 + $0x58] sm:$0xff] }
 0x35c   : > { %v1985_v44 = vmul.f32 %v1953_v46, %v1953_v46  ;;  %2439 = vmatmul.lmr.bf16.gmra.16.mxu2  ;;  %2478 = vmatmul.lmr.bf16.gmra.16.mxu3 }
 0x35e   : > { %v2019_v6 = vsel %vm4641_vm2, %v1985_v44, 0.0  ;;  %vm4657_vm2 = vmmov %vm4648_vm0 }
 0x35f   : > { %v2020_v40 = vadd.f32 %v2019_v6, %v2018_v21  ;;  %v1721_v15 = vpop.f32.mrf.mxu2  ;;  %v1834_v36 = vpop.f32.mrf.mxu3 }
 0x360   : > { %v1835_v25 = vadd.f32 %v1834_v36, %v1721_v15 }
 0x362   : > { %1922 = vst.msk [vmem:[%s4262_s13 + $0x20] sm:$0xff] %vm4642_vm8, %v1835_v25  ;;  %v1954_v22 = vsub.f32 %v1835_v25, %v2688_v48  ;;  %vm4658_vm8 = vmmov %vm4648_vm0  ;;  %v2696_v48 = vld [vmem:[%s2904_s9 + $0x60] sm:$0xff] }
 0x364   : > { %v1986_v41 = vmul.f32 %v1954_v22, %v1954_v22  ;;  %2440 = vmatmul.lmr.bf16.gmra.16.mxu2  ;;  %2479 = vmatmul.lmr.bf16.gmra.16.mxu3 }
 0x366   : > { %v2021_v20 = vsel %vm4643_vm11, %v1986_v41, 0.0  ;;  %vm4659_vm11 = vmmov %vm4648_vm0 }
 0x367   : > { %v2022_v32 = vadd.f32 %v2021_v20, %v2020_v40  ;;  %v1724_v30 = vpop.f32.mrf.mxu2  ;;  %v1837_v19 = vpop.f32.mrf.mxu3 }
 0x368   : > { %v1838_v24 = vadd.f32 %v1837_v19, %v1724_v30 }
 0x36a   : > { %1923 = vst.msk [vmem:[%s4262_s13 + $0x28] sm:$0xff] %vm4644_vm1, %v1838_v24  ;;  %v1955_v23 = vsub.f32 %v1838_v24, %v2689_v2  ;;  %vm4660_vm1 = vmmov %vm4648_vm0  ;;  %v2697_v2 = vld [vmem:[%s2904_s9 + $0x68] sm:$0xff] }
 0x36c   : > { %v1987_v51 = vmul.f32 %v1955_v23, %v1955_v23  ;;  %2441 = vmatmul.lmr.bf16.gmra.16.mxu2  ;;  %2480 = vmatmul.lmr.bf16.gmra.16.mxu3 }
 0x36e   : > { %v2023_v55 = vsel %vm4645_vm14, %v1987_v51, 0.0  ;;  %vm4661_vm14 = vmmov %vm4648_vm0 }
 0x36f   : > { %v2024_v37 = vadd.f32 %v2023_v55, %v2022_v32  ;;  %v1727_v45 = vpop.f32.mrf.mxu2  ;;  %v1840_v52 = vpop.f32.mrf.mxu3 }
 0x370   : > { %v1841_v63 = vadd.f32 %v1840_v52, %v1727_v45 }
 0x372   : > { %1924 = vst.msk [vmem:[%s4262_s13 + $0x30] sm:$0xff] %vm4646_vm13, %v1841_v63  ;;  %v1956_v14 = vsub.f32 %v1841_v63, %v2690_v0  ;;  %vm4662_vm13 = vmmov %vm4648_vm0  ;;  %v2698_v0 = vld [vmem:[%s2904_s9 + $0x70] sm:$0xff] }
 0x374   : > { %v1988_v5 = vmul.f32 %v1956_v14, %v1956_v14  ;;  %2442 = vmatmul.lmr.bf16.gmra.16.mxu2  ;;  %2481 = vmatmul.lmr.bf16.gmra.16.mxu3 }
 0x376   : > { %v2025_v34 = vsel %vm4647_vm12, %v1988_v5, 0.0  ;;  %vm4663_vm12 = vmmov %vm4648_vm0 }
 0x377   : > { %v2026_v28 = vadd.f32 %v2025_v34, %v2024_v37  ;;  %v1730_v59 = vpop.f32.mrf.mxu2  ;;  %v1843_v27 = vpop.f32.mrf.mxu3 }
 0x378   : > { %v1844_v33 = vadd.f32 %v1843_v27, %v1730_v59 }
 0x37a   : > { %1925 = vst.msk [vmem:[%s4262_s13 + $0x38] sm:$0xff] %vm4648_vm0, %v1844_v33  ;;  %v1957_v26 = vsub.f32 %v1844_v33, %v2691_v18  ;;  %v2699_v18 = vld [vmem:[%s2904_s9 + $0x78] sm:$0xff] }
 0x37c   : > { %v1989_v62 = vmul.f32 %v1957_v26, %v1957_v26  ;;  %2443 = vmatmul.lmr.bf16.gmra.16.mxu2  ;;  %2482 = vmatmul.lmr.bf16.gmra.16.mxu3 }
 0x37e   : > { %v2027_v42 = vsel %vm4649_vm3, %v1989_v62, 0.0  ;;  %vm4664_vm3 = vmmov %vm4648_vm0 }
 0x37f   : > { %v2028_v3 = vadd.f32 %v2027_v42, %v2026_v28  ;;  %v1733_v54 = vpop.f32.mrf.mxu2  ;;  %v1846_v13 = vpop.f32.mrf.mxu3 }
 0x380   : > { %v1847_v31 = vadd.f32 %v1846_v13, %v1733_v54 }
 0x382   : > { %1926 = vst.msk [vmem:[%s4262_s13 + $0x40] sm:$0xff] %vm4650_vm15, %v1847_v31  ;;  %v1958_v43 = vsub.f32 %v1847_v31, %v2692_v47  ;;  %vm4665_vm15 = vmmov %vm4648_vm0  ;;  %v2700_v47 = vld [vmem:[%s2904_s9 + $0x80] sm:$0xff] }
 0x384   : > { %v1990_v9 = vmul.f32 %v1958_v43, %v1958_v43  ;;  %2444 = vmatmul.lmr.bf16.gmra.16.mxu2  ;;  %2483 = vmatmul.lmr.bf16.gmra.16.mxu3 }
 0x386   : > { %v2029_v50 = vsel %vm4651_vm9, %v1990_v9, 0.0  ;;  %vm4666_vm9 = vmmov %vm4648_vm0 }
 0x387   : > { %v2030_v57 = vadd.f32 %v2029_v50, %v2028_v3  ;;  %v1736_v38 = vpop.f32.mrf.mxu2  ;;  %v1849_v29 = vpop.f32.mrf.mxu3 }
 0x388   : > { %v1850_v11 = vadd.f32 %v1849_v29, %v1736_v38 }
 0x38a   : > { %1927 = vst.msk [vmem:[%s4262_s13 + $0x48] sm:$0xff] %vm4652_vm6, %v1850_v11  ;;  %v1959_v53 = vsub.f32 %v1850_v11, %v2693_v8 }
 0x38c   : > { %v1991_v17 = vmul.f32 %v1959_v53, %v1959_v53  ;;  %2445 = vmatmul.lmr.bf16.gmra.16.mxu2  ;;  %2484 = vmatmul.lmr.bf16.gmra.16.mxu3 }
 0x38e   : > { %v2031_v61 = vsel %vm4653_vm5, %v1991_v17, 0.0 }
 0x38f   : > { %v2032_v16 = vadd.f32 %v2031_v61, %v2030_v57  ;;  %v1739_v35 = vpop.f32.mrf.mxu2  ;;  %v1852_v39 = vpop.f32.mrf.mxu3 }
 0x390   : > { %v1853_v58 = vadd.f32 %v1852_v39, %v1739_v35 }
 0x392   : > { %1928 = vst.msk [vmem:[%s4262_s13 + $0x50] sm:$0xff] %vm4654_vm7, %v1853_v58  ;;  %v1960_v7 = vsub.f32 %v1853_v58, %v2694_v4 }
 0x394   : > { %v1992_v60 = vmul.f32 %v1960_v7, %v1960_v7  ;;  %2446 = vmatmul.lmr.bf16.gmra.16.mxu2  ;;  %2485 = vmatmul.lmr.bf16.gmra.16.mxu3 }
 0x396   : > { %v2033_v1 = vsel %vm4655_vm4, %v1992_v60, 0.0 }
 0x397   : > { %v2034_v21 = vadd.f32 %v2033_v1, %v2032_v16  ;;  %v1742_v12 = vpop.f32.mrf.mxu2  ;;  %v1855_v49 = vpop.f32.mrf.mxu3 }
 0x398   : > { %v1856_v10 = vadd.f32 %v1855_v49, %v1742_v12 }
 0x39a   : > { %1929 = vst.msk [vmem:[%s4262_s13 + $0x58] sm:$0xff] %vm4656_vm10, %v1856_v10  ;;  %v1961_v46 = vsub.f32 %v1856_v10, %v2695_v56 }
 0x39c   : > { %v1993_v44 = vmul.f32 %v1961_v46, %v1961_v46  ;;  %2447 = vmatmul.lmr.bf16.gmra.16.mxu2  ;;  %2486 = vmatmul.lmr.bf16.gmra.16.mxu3 }
 0x39e   : > { %v2035_v6 = vsel %vm4657_vm2, %v1993_v44, 0.0 }
 0x39f   : > { %v2036_v40 = vadd.f32 %v2035_v6, %v2034_v21  ;;  %v1745_v15 = vpop.f32.mrf.mxu2  ;;  %v1858_v36 = vpop.f32.mrf.mxu3 }
 0x3a0   : > { %v1859_v25 = vadd.f32 %v1858_v36, %v1745_v15 }
 0x3a2   : > { %1930 = vst.msk [vmem:[%s4262_s13 + $0x60] sm:$0xff] %vm4658_vm8, %v1859_v25  ;;  %v1962_v22 = vsub.f32 %v1859_v25, %v2696_v48 }
 0x3a4   : > { %v1994_v41 = vmul.f32 %v1962_v22, %v1962_v22  ;;  %2448 = vmatmul.lmr.bf16.gmra.16.mxu2  ;;  %2487 = vmatmul.lmr.bf16.gmra.16.mxu3 }
 0x3a6   : > { %v2037_v20 = vsel %vm4659_vm11, %v1994_v41, 0.0 }
 0x3a7   : > { %v2038_v32 = vadd.f32 %v2037_v20, %v2036_v40  ;;  %v1748_v30 = vpop.f32.mrf.mxu2  ;;  %v1861_v19 = vpop.f32.mrf.mxu3 }
 0x3a8   : > { %v1862_v24 = vadd.f32 %v1861_v19, %v1748_v30 }
 0x3aa   : > { %1931 = vst.msk [vmem:[%s4262_s13 + $0x68] sm:$0xff] %vm4660_vm1, %v1862_v24  ;;  %v1963_v23 = vsub.f32 %v1862_v24, %v2697_v2 }
 0x3ac   : > { %v1995_v51 = vmul.f32 %v1963_v23, %v1963_v23  ;;  %2449 = vmatmul.lmr.bf16.gmra.16.mxu2  ;;  %2488 = vmatmul.lmr.bf16.gmra.16.mxu3 }
 0x3ae   : > { %v2039_v55 = vsel %vm4661_vm14, %v1995_v51, 0.0 }
 0x3af   : > { %v2040_v37 = vadd.f32 %v2039_v55, %v2038_v32  ;;  %v1751_v45 = vpop.f32.mrf.mxu2  ;;  %v1864_v52 = vpop.f32.mrf.mxu3 }
 0x3b0   : > { %v1865_v63 = vadd.f32 %v1864_v52, %v1751_v45 }
 0x3b2   : > { %1932 = vst.msk [vmem:[%s4262_s13 + $0x70] sm:$0xff] %vm4662_vm13, %v1865_v63  ;;  %v1964_v14 = vsub.f32 %v1865_v63, %v2698_v0 }
 0x3b4   : > { %v1996_v5 = vmul.f32 %v1964_v14, %v1964_v14  ;;  %2450 = vmatmul.lmr.bf16.gmra.16.mxu2  ;;  %2489 = vmatmul.lmr.bf16.gmra.16.mxu3 }
 0x3b6   : > { %v2041_v34 = vsel %vm4663_vm12, %v1996_v5, 0.0 }
 0x3b7   : > { %v2042_v28 = vadd.f32 %v2041_v34, %v2040_v37  ;;  %v1754_v59 = vpop.f32.mrf.mxu2  ;;  %v1867_v27 = vpop.f32.mrf.mxu3 }
 0x3b8   : > { %v1868_v33 = vadd.f32 %v1867_v27, %v1754_v59 }
 0x3ba   : > { %1933 = vst.msk [vmem:[%s4262_s13 + $0x78] sm:$0xff] %vm4648_vm0, %v1868_v33  ;;  %v1965_v26 = vsub.f32 %v1868_v33, %v2699_v18 }
 0x3bc   : > { %v1997_v62 = vmul.f32 %v1965_v26, %v1965_v26 }
 0x3be   : > { %v2043_v42 = vsel %vm4664_vm3, %v1997_v62, 0.0 }
 0x3bf   : > { %v2044_v3 = vadd.f32 %v2043_v42, %v2042_v28  ;;  %v1757_v54 = vpop.f32.mrf.mxu2  ;;  %v1870_v13 = vpop.f32.mrf.mxu3 }
 0x3c0   : > { %v1871_v31 = vadd.f32 %v1870_v13, %v1757_v54 }
 0x3c2   : > { %1934 = vst.msk [vmem:[%s4262_s13 + $0x80] sm:$0xff] %vm4665_vm15, %v1871_v31  ;;  %v1966_v43 = vsub.f32 %v1871_v31, %v2700_v47 }
 0x3c4   : > { %v1998_v9 = vmul.f32 %v1966_v43, %v1966_v43 }
 0x3c6   : > { %v2045_v50 = vsel %vm4666_vm9, %v1998_v9, 0.0 }
 0x3c7   : > { %v2046_v57 = vadd.f32 %v2045_v50, %v2044_v3  ;;  %v1760_v38 = vpop.f32.mrf.mxu2  ;;  %v1873_v29 = vpop.f32.mrf.mxu3 }
 0x3c8   : > { %v1874_v11 = vadd.f32 %v1873_v29, %v1760_v38 }
 0x3c9   : > { %2743 = shalt.err (!%p2740_p3)
}
 0x3ca   : > { %2522 = dma.vmem_to_hbm [thread:$0]  (%p2885_p5), %s2112_s16, 32, %s2114_s17, %s2091_s23   ;;  %vm4667_vm6 = vmmov %vm4648_vm0  ;;  %v2701_v8 = vld [vmem:[%s2904_s9 + $0x88] sm:$0xff]  ;;  %v2702_v4 = vld [vmem:[%s2904_s9 + $0x90] sm:$0xff] }
 0x3cb   : > { %1935 = vst.msk [vmem:[%s4262_s13 + $0x88] sm:$0xff] %vm4667_vm6, %v1874_v11  ;;  %v1967_v53 = vsub.f32 %v1874_v11, %v2701_v8  ;;  %vm4668_vm5 = vmmov %vm4648_vm0  ;;  %v2703_v56 = vld [vmem:[%s2904_s9 + $0x98] sm:$0xff]  ;;  %v2704_v48 = vld [vmem:[%s2904_s9 + $0xa0] sm:$0xff]  ;;  %s2122_s15 = scalar_lea.hbm %s4446_s5, %s2868_s22  ;;  %s235_s16 = scalar_lea.vmem [#allocation4], %s4111_s7 }
 0x3cc   : > { %vm4669_vm7 = vmmov %vm4648_vm0  ;;  %v2705_v3 = vld [vmem:[%s2904_s9 + $0xa8] sm:$0xff]  ;;  %v2706_v31 = vld [vmem:[%s2904_s9 + $0xb0] sm:$0xff]  ;;  %s2096_s17 = scalar_lea.sflag [#allocation5], %s4111_s7  ;;  %s2764_s8 = scalar_lea.hbm %s4446_s5, 2 }
 0x3cd   : > { %v1999_v17 = vmul.f32 %v1967_v53, %v1967_v53  ;;  %vm4670_vm4 = vmmov %vm4648_vm0  ;;  %v2707_v9 = vld [vmem:[%s2904_s9 + $0xb8] sm:$0xff]  ;;  %v2708_v38 = vld [vmem:[%s2904_s9 + $0xc0] sm:$0xff] }
 0x3ce   : > { %vm4671_vm10 = vmmov %vm4648_vm0 }
 0x3cf   : > { %v2047_v61 = vsel %vm4668_vm5, %v1999_v17, 0.0  ;;  %v1763_v35 = vpop.f32.mrf.mxu2  ;;  %v1876_v39 = vpop.f32.mrf.mxu3  ;;  %vm4672_vm2 = vmmov %vm4648_vm0 }
 0x3d0   : > { %v2048_v16 = vadd.f32 %v2047_v61, %v2046_v57  ;;  %v1877_v58 = vadd.f32 %v1876_v39, %v1763_v35  ;;  %vm4673_vm8 = vmmov %vm4648_vm0  ;;  %v2709_v61 = vld [vmem:[%s2904_s9 + $0xc8] sm:$0xff] }
 0x3d1   : > { %vm4674_vm11 = vmmov %vm4648_vm0 }
 0x3d2   : > { %1936 = vst.msk [vmem:[%s4262_s13 + $0x90] sm:$0xff] %vm4669_vm7, %v1877_v58  ;;  %v1968_v7 = vsub.f32 %v1877_v58, %v2702_v4  ;;  %vm4675_vm1 = vmmov %vm4648_vm0  ;;  %v2710_v4 = vld [vmem:[%s2904_s9 + $0xd0] sm:$0xff] }
 0x3d3   : > { %vm4676_vm14 = vmmov %vm4648_vm0 }
 0x3d4   : > { %v2000_v60 = vmul.f32 %v1968_v7, %v1968_v7  ;;  %vm4677_vm13 = vmmov %vm4648_vm0 }
 0x3d5   : > { %vm4678_vm12 = vmmov %vm4648_vm0 }
 0x3d6   : > { %v2049_v1 = vsel %vm4670_vm4, %v2000_v60, 0.0  ;;  %vm4679_vm3 = vmmov %vm4648_vm0 }
 0x3d7   : > { %v2050_v21 = vadd.f32 %v2049_v1, %v2048_v16  ;;  %v1766_v12 = vpop.f32.mrf.mxu2  ;;  %v1879_v49 = vpop.f32.mrf.mxu3  ;;  %vm4680_vm15 = vmmov %vm4648_vm0 }
 0x3d8   : > { %v1880_v10 = vadd.f32 %v1879_v49, %v1766_v12  ;;  %vm4681_vm9 = vmmov %vm4648_vm0  ;;  %v2711_v12 = vld [vmem:[%s2904_s9 + $0xd8] sm:$0xff] }
 0x3d9   : > { %vm4682_vm6 = vmmov %vm4648_vm0 }
 0x3da   : > { %1937 = vst.msk [vmem:[%s4262_s13 + $0x98] sm:$0xff] %vm4671_vm10, %v1880_v10  ;;  %v1969_v46 = vsub.f32 %v1880_v10, %v2703_v56  ;;  %vm4683_vm5 = vmmov %vm4648_vm0 }
 0x3db   : > { %vm4684_vm7 = vmmov %vm4648_vm0 }
 0x3dc   : > { %v2001_v44 = vmul.f32 %v1969_v46, %v1969_v46  ;;  %vm4685_vm4 = vmmov %vm4648_vm0 }
 0x3dd   : > { %vm4686_vm10 = vmmov %vm4648_vm0 }
 0x3de   : > { %v2051_v6 = vsel %vm4672_vm2, %v2001_v44, 0.0  ;;  %v2712_v44 = vld [vmem:[%s2904_s9 + $0xe0] sm:$0xff]  ;;  %vm4687_vm2 = vmmov %vm4648_vm0 }
 0x3df   : > { %v2052_v40 = vadd.f32 %v2051_v6, %v2050_v21  ;;  %v1769_v15 = vpop.f32.mrf.mxu2  ;;  %v1882_v36 = vpop.f32.mrf.mxu3 }
 0x3e0   : > { %v1883_v25 = vadd.f32 %v1882_v36, %v1769_v15 }
 0x3e2   : > { %1938 = vst.msk [vmem:[%s4262_s13 + $0xa0] sm:$0xff] %vm4673_vm8, %v1883_v25  ;;  %v1970_v22 = vsub.f32 %v1883_v25, %v2704_v48  ;;  %vm4688_vm8 = vmmov %vm4648_vm0 }
 0x3e4   : > { %v2002_v41 = vmul.f32 %v1970_v22, %v1970_v22  ;;  %v2713_v22 = vld [vmem:[%s2904_s9 + $0xe8] sm:$0xff] }
 0x3e6   : > { %v2053_v20 = vsel %vm4674_vm11, %v2002_v41, 0.0  ;;  %vm4689_vm11 = vmmov %vm4648_vm0 }
 0x3e7   : > { %v2054_v32 = vadd.f32 %v2053_v20, %v2052_v40  ;;  %v1772_v30 = vpop.f32.mrf.mxu2  ;;  %v1885_v19 = vpop.f32.mrf.mxu3 }
 0x3e8   : > { %v1886_v24 = vadd.f32 %v1885_v19, %v1772_v30 }
 0x3ea   : > { %1939 = vst.msk [vmem:[%s4262_s13 + $0xa8] sm:$0xff] %vm4675_vm1, %v1886_v24  ;;  %v1971_v54 = vsub.f32 %v1886_v24, %v2705_v3  ;;  %v2714_v24 = vld [vmem:[%s2904_s9 + $0xf0] sm:$0xff]  ;;  %vm4690_vm1 = vmmov %vm4648_vm0 }
 0x3ec   : > { %v2003_v43 = vmul.f32 %v1971_v54, %v1971_v54 }
 0x3ee   : > { %v2055_v53 = vsel %vm4682_vm6, %v2003_v43, 0.0 }
 0x3ef   : > { %v1775_v2 = vpop.f32.mrf.mxu2  ;;  %v1888_v23 = vpop.f32.mrf.mxu3  ;;  %v2056_v60 = vadd.f32 %v2055_v53, %v2054_v32 }
 0x3f0   : > { %v1889_v51 = vadd.f32 %v1888_v23, %v1775_v2 }
 0x3f2   : > { %1940 = vst.msk [vmem:[%s4262_s13 + $0xb0] sm:$0xff] %vm4676_vm14, %v1889_v51  ;;  %v1972_v47 = vsub.f32 %v1889_v51, %v2706_v31  ;;  %vm4691_vm14 = vmmov %vm4648_vm0 }
 0x3f4   : > { %v2004_v57 = vmul.f32 %v1972_v47, %v1972_v47 }
 0x3f6   : > { %v2057_v39 = vsel %vm4683_vm5, %v2004_v57, 0.0 }
 0x3f7   : > { %v1778_v55 = vpop.f32.mrf.mxu2  ;;  %v1891_v37 = vpop.f32.mrf.mxu3  ;;  %v2058_v10 = vadd.f32 %v2057_v39, %v2056_v60 }
 0x3f8   : > { %v1892_v45 = vadd.f32 %v1891_v37, %v1778_v55 }
 0x3fa   : > { %1941 = vst.msk [vmem:[%s4262_s13 + $0xb8] sm:$0xff] %vm4677_vm13, %v1892_v45  ;;  %v1973_v50 = vsub.f32 %v1892_v45, %v2707_v9  ;;  %vm4692_vm13 = vmmov %vm4648_vm0 }
 0x3fc   : > { %v2005_v17 = vmul.f32 %v1973_v50, %v1973_v50 }
 0x3fe   : > { %v2059_v1 = vsel %vm4685_vm4, %v2005_v17, 0.0 }
 0x3ff   : > { %v1781_v52 = vpop.f32.mrf.mxu2  ;;  %v1894_v63 = vpop.f32.mrf.mxu3  ;;  %v2060_v40 = vadd.f32 %v2059_v1, %v2058_v10 }
 0x400   : > { %v1895_v0 = vadd.f32 %v1894_v63, %v1781_v52 }
 0x402   : > { %1942 = vst.msk [vmem:[%s4262_s13 + $0xc0] sm:$0xff] %vm4678_vm12, %v1895_v0  ;;  %v1974_v29 = vsub.f32 %v1895_v0, %v2708_v38  ;;  %vm4693_vm12 = vmmov %vm4648_vm0 }
 0x404   : > { %v2006_v58 = vmul.f32 %v1974_v29, %v1974_v29 }
 0x406   : > { %v2061_v56 = vsel %vm4686_vm10, %v2006_v58, 0.0 }
 0x407   : > { %v1784_v14 = vpop.f32.mrf.mxu2  ;;  %v1897_v5 = vpop.f32.mrf.mxu3  ;;  %v2062_v32 = vadd.f32 %v2061_v56, %v2060_v40 }
 0x408   : > { %v1898_v34 = vadd.f32 %v1897_v5, %v1784_v14 }
 0x40a   : > { %1943 = vst.msk [vmem:[%s4262_s13 + $0xc8] sm:$0xff] %vm4648_vm0, %v1898_v34  ;;  %v1975_v16 = vsub.f32 %v1898_v34, %v2709_v61 }
 0x40c   : > { %v2007_v21 = vmul.f32 %v1975_v16, %v1975_v16 }
 0x40e   : > { %v2063_v25 = vsel %vm4687_vm2, %v2007_v21, 0.0 }
 0x40f   : > { %v1787_v28 = vpop.f32.mrf.mxu2  ;;  %v1900_v59 = vpop.f32.mrf.mxu3  ;;  %v2064_v23 = vadd.f32 %v2063_v25, %v2062_v32 }
 0x410   : > { %v1901_v27 = vadd.f32 %v1900_v59, %v1787_v28 }
 0x412   : > { %1944 = vst.msk [vmem:[%s4262_s13 + $0xd0] sm:$0xff] %vm4679_vm3, %v1901_v27  ;;  %v1976_v7 = vsub.f32 %v1901_v27, %v2710_v4  ;;  %v2715_v27 = vld [vmem:[%s2904_s9 + $0xf8] sm:$0xff]  ;;  %vm4694_vm3 = vmmov %vm4648_vm0  ;;  %s2126_s9 = sshll.u32 %s2122_s15, 4  ;;  %s2127_s9 = int_to_ptr.hbm [resolvable:$true] %s2126_s9 }
 0x413   : > { %s2758_s23 = sshra.s32 %s2127_s9, 4  ;;  %s2759_s23 = int_to_ptr.hbm [resolvable:$true] %s2758_s23 }
 0x414   : > { %v2008_v46 = vmul.f32 %v1976_v7, %v1976_v7  ;;  %s2760_s25 = scalar_lea.hbm %s2759_s23, 1  ;;  %p2765_p9 = scmp.lt.s32.totalorder %s2759_s23, %s4446_s5 }
 0x415   : > { %p2761_p4 = scmp.ne.s32.totalorder %s2759_s23, %s2760_s25  ;;  %p2766_p10 = scmp.lt.s32.totalorder %s2764_s8, %s2760_s25 }
 0x416   : > { %v2065_v30 = vsel %vm4688_vm8, %v2008_v46, 0.0 }
 0x417   : > { %v1790_v33 = vpop.f32.mrf.mxu2  ;;  %v1903_v18 = vpop.f32.mrf.mxu3  ;;  %v2066_v37 = vadd.f32 %v2065_v30, %v2064_v23  ;;  %p2762_p7 = pnand %p2761_p4, %p2885_p5  ;;  %p2767_p11 = por %p2766_p10, %p2765_p9 }
 0x418   : > { %v1904_v26 = vadd.f32 %v1903_v18, %v1790_v33 }
 0x419   : > { %p2763_p8 = pneg %p2762_p7 }
 0x41a   : > { %1945 = vst.msk [vmem:[%s4262_s13 + $0xd8] sm:$0xff] %vm4680_vm15, %v1904_v26  ;;  %v1977_v49 = vsub.f32 %v1904_v26, %v2711_v12  ;;  %vm2083_vm15 = vcmask 253952  }
 0x41b   : > { %p2768_p12 = pnand %p2767_p11, %p2763_p8 }
 0x41c   : > { %v2009_v48 = vmul.f32 %v1977_v49, %v1977_v49 }
 0x41e   : > { %v2067_v51 = vsel %vm4690_vm1, %v2009_v48, 0.0 }
 0x41f   : > { %v1793_v62 = vpop.f32.mrf.mxu2  ;;  %v1906_v42 = vpop.f32.mrf.mxu3  ;;  %v2068_v63 = vadd.f32 %v2067_v51, %v2066_v37 }
 0x420   : > { %v1907_v13 = vadd.f32 %v1906_v42, %v1793_v62 }
 0x422   : > { %1946 = vst.msk [vmem:[%s4262_s13 + $0xe0] sm:$0xff] %vm4681_vm9, %v1907_v13  ;;  %v1978_v6 = vsub.f32 %v1907_v13, %v2712_v44 }
 0x424   : > { %v2010_v19 = vmul.f32 %v1978_v6, %v1978_v6 }
 0x426   : > { %v2069_v45 = vsel %vm4691_vm14, %v2010_v19, 0.0 }
 0x427   : > { %v1796_v11 = vpop.f32.mrf.mxu2  ;;  %v1909_v8 = vpop.f32.mrf.mxu3  ;;  %v2070_v28 = vadd.f32 %v2069_v45, %v2068_v63 }
 0x428   : > { %v1910_v35 = vadd.f32 %v1909_v8, %v1796_v11 }
 0x42a   : > { %1947 = vst.msk [vmem:[%s4262_s13 + $0xe8] sm:$0xff] %vm4684_vm7, %v1910_v35  ;;  %v1979_v41 = vsub.f32 %v1910_v35, %v2713_v22 }
 0x42c   : > { %v2011_v55 = vmul.f32 %v1979_v41, %v1979_v41 }
 0x42e   : > { %v2071_v5 = vsel %vm4692_vm13, %v2011_v55, 0.0 }
 0x42f   : > { %v1799_v15 = vpop.f32.mrf.mxu2  ;;  %v1912_v36 = vpop.f32.mrf.mxu3  ;;  %v2072_v18 = vadd.f32 %v2071_v5, %v2070_v28 }
 0x430   : > { %v1913_v20 = vadd.f32 %v1912_v36, %v1799_v15 }
 0x432   : > { %1948 = vst.msk [vmem:[%s4262_s13 + $0xf0] sm:$0xff] %vm4689_vm11, %v1913_v20  ;;  %v1980_v2 = vsub.f32 %v1913_v20, %v2714_v24 }
 0x434   : > { %v2012_v52 = vmul.f32 %v1980_v2, %v1980_v2 }
 0x436   : > { %v2073_v59 = vsel %vm4693_vm12, %v2012_v52, 0.0 }
 0x437   : > { %v1802_v0 = vpop.f32.mrf.mxu2  ;;  %v1915_v14 = vpop.f32.mrf.mxu3  ;;  %v2074_v62 = vadd.f32 %v2073_v59, %v2072_v18 }
 0x438   : > { %v1916_v34 = vadd.f32 %v1915_v14, %v1802_v0 }
 0x43a   : > { %1949 = vst.msk [vmem:[%s4262_s13 + $0xf8] sm:$0xff] %vm4648_vm0, %v1916_v34  ;;  %v1981_v33 = vsub.f32 %v1916_v34, %v2715_v27  ;;  %s2124_s13 = sshll.u32 %s235_s16, 4  ;;  %s2125_s13 = int_to_ptr.vmem [resolvable:$true] %s2124_s13 }
 0x43c   : > { %v2013_v26 = vmul.f32 %v1981_v33, %v1981_v33 }
 0x43e   : > { %v2075_v42 = vsel %vm4694_vm3, %v2013_v26, 0.0 }
 0x43f   : > { %v2076_v3 = vadd.f32 %v2075_v42, %v2074_v62 }
 0x441   : > { %v2077_v54 = vrot.slane %v2076_v3, 4 }
 0x443   : > { %v2078_v13 = vadd.f32 %v2077_v54, %v2076_v3 }
 0x445   : > { %v2079_v31 = vrot.slane %v2078_v13, 2 }
 0x447   : > { %v2080_v47 = vadd.f32 %v2079_v31, %v2078_v13 }
 0x449   : > { %v2081_v43 = vrot.slane %v2080_v47, 1 }
 0x44b   : > { %v2082_v9 = vadd.f32 %v2081_v43, %v2080_v47 }
 0x44d   : > { %2084 = vst.msk [vmem:[%s235_s16] sm:$0x1] %vm2083_vm15, %v2082_v9 }
 0x44e   : > { %2771 = shalt.err (!%p2768_p12)
}
 0x44f   : > { %2523 = dma.vmem_to_hbm [thread:$0]  (%p2885_p5), %s2125_s13, 16, %s2127_s9, %s2096_s17  }
 0x450 PF: > { %p2533_p13 = scmp.ge.s32.totalorder %s2810_s21, 2  ;;  %s2146_s7 = sand.u32 1, %s2798_s18  }
 0x451   : > { %s2147_s10 = scalar_lea.sflag [#allocation3], %s2146_s7 }
 0x452   : > { %p2527_p0 = pnand %p2533_p13, %p2889_p6 }
 0x454   : > { %p2528_p1 = pneg %p2527_p0 }
 0x456   : > { %2789 = dma.done.wait (%p2528_p1), %s2147_s10, 32  }
 0x457   : > { %2791 = vsyncadd (%p2528_p1), %s2147_s10, 4294967264  ;;  %s2157_s30 = scalar_lea.sflag [#allocation5], %s2146_s7 }
 0x458   : > { %2793 = dma.done.wait (%p2528_p1), %s2157_s30, 16  }
 0x459   : > { %2795 = vsyncadd (%p2528_p1), %s2157_s30, 4294967280  ;;  %p19_p5 = scmp.ge.s32.totalorder %s2872_s24, 4   ;;  %s4695_s18 = smov %s2802_s19 }
 0x45a   : > { %s4696_s19 = smov %s2806_s20  ;;  %s4697_s20 = smov %s2883_s27 }
 0x45b   : > { %s4698_s21 = smov %s2872_s24  ;;  %21 = sbr.rel (!%p19_p5) target bundleno = 5 (0x5), region = 96 }
 0x460   :  { %2162 = vsyncpa [#allocation3], 1 }
 0x461   :  { %2164 = vsyncpa [#allocation3 + $0x1], 1 }
 0x462   :  { %2165 = vsyncpa [#allocation5], 1 }
 0x463   :  { %2167 = vsyncpa [#allocation5 + $0x1], 1 }

</bundles_post_ra>
